<compile_context>
chip_gen: v5e
topology: v5e:2x2
jax: 0.10.0
libtpu: 0.0.40
codegen_flags: <defaults>
</compile_context>

<pallas_src>
import jax
import jax.numpy as jnp
from jax import lax
from jax.experimental import pallas as pl
from jax.experimental.pallas import tpu as pltpu

# Model / problem dimensions (small, consistent with the module's forward).
H = 16            # height
W = 16            # width
HW = H * W
C = 4             # n_channels
F_CH = 32         # conv output channels inside FeatureGenerator
D = 32            # feature dimension produced by FeatureGenerator
K_IM2COL = 9 * C  # contraction width of the fused conv matmul (36)
PACK = 4          # samples packed per output row -> 4*D = 128 lanes (dense)


def _round_up(x, m):
    return (x + m - 1) // m * m


def feature_generator_kernel(p_ref, wconv_ref, bconv_ref, wfc4_ref, bfc4_ref,
                             out_ref, pooled_ref):
    """Fused im2col-conv3x3 + bias + ReLU + global pool + linear.

    p_ref      : [SB*H*W, 9*C]   bf16 im2col patch block (lane-dense)
    wconv_ref  : [9*C, F_CH]     bf16 flattened conv taps (tap-major)
    bconv_ref  : [1, F_CH]       f32 conv bias
    wfc4_ref   : [4*F_CH, 4*D]   f32 block-diag FC weight, 1/(H*W) pre-folded
    bfc4_ref   : [1, 4*D]        f32 tiled FC bias
    out_ref    : [SB//4, 4*D]    f32 lane-dense packed features
    pooled_ref : [SB, F_CH]      f32 VMEM scratch (per-sample pooled sums)
    """
    sb = pooled_ref.shape[0]          # samples in this block (static)

    # Hoisted out of the per-sample loop: weight vregs + bias broadcast
    # (JAX does not CSE broadcast_in_dim; materialize it once).
    wconv = wconv_ref[...]
    bconv = jnp.broadcast_to(bconv_ref[...], (HW, F_CH))

    def body(i, carry):
        row0 = pl.multiple_of(i * HW, HW)
        patch = p_ref[pl.ds(row0, HW), :]                        # [256, 36] bf16
        acc = jnp.dot(patch, wconv,
                      preferred_element_type=jnp.float32)        # [256, F_CH] f32
        acc = jnp.maximum(acc + bconv, 0.0)                      # bias + ReLU
        # Global pooling: plain sum; the 1/(H*W) scale lives inside wfc4.
        pooled_ref[pl.ds(i, 1), :] = acc.sum(axis=0, keepdims=True)
        return carry

    lax.fori_loop(0, sb, body, 0, unroll=True)

    # Pack PACK samples along lanes -> [SB//PACK, PACK*F_CH] (128 lanes), so
    # the FC matmul and the output store are fully lane-dense (no vst.msk).
    # Lane group j of row r holds sample j*(SB//PACK) + r of this block.
    sb4 = sb // PACK
    packed = jnp.concatenate(
        [pooled_ref[pl.ds(j * sb4, sb4), :] for j in range(PACK)], axis=-1)
    feat = jnp.dot(packed, wfc4_ref[...],
                   preferred_element_type=jnp.float32) + bfc4_ref[...]
    out_ref[...] = feat.astype(out_ref.dtype)


def feature_generator(x_nchw, params, samples_per_block=32):
    """x_nchw: [N, C, H, W] float32 -> [N, D] features (one pallas_call)."""
    wconv, bconv, wfc, bfc = params
    n = x_nchw.shape[0]

    # Samples per grid block: a multiple of PACK.  Small batches -> grid=(1,);
    # large batches -> pipelined, ("parallel",) sample grid (2 TCs on v7x).
    sb = max(PACK, min(_round_up(samples_per_block, PACK), _round_up(n, PACK)))
    n_pad = _round_up(n, sb)
    if n_pad != n:
        x_nchw = jnp.pad(x_nchw, ((0, n_pad - n), (0, 0), (0, 0), (0, 0)))

    # --- im2col construction (fuses transpose/pad/slice/concat into the XLA
    # op feeding the kernel; the kernel sees a lane-dense bf16 operand). -----
    x = jnp.transpose(x_nchw, (0, 2, 3, 1))                    # NCHW -> NHWC
    xp = jnp.pad(x, ((0, 0), (1, 1), (1, 1), (0, 0)))          # 'same' zero pad
    patches = jnp.concatenate(
        [xp[:, dy:dy + H, dx:dx + W, :] for dy in range(3) for dx in range(3)],
        axis=-1).reshape(n_pad * HW, K_IM2COL).astype(jnp.bfloat16)

    wconv_flat = wconv.reshape(K_IM2COL, F_CH).astype(jnp.bfloat16)
    # Fold the 1/(H*W) GAP scale into the FC weight and block-diagonalize it so
    # PACK samples' features come out of one lane-dense 128-wide matmul.
    wfc4 = jnp.kron(jnp.eye(PACK, dtype=jnp.float32), wfc * (1.0 / HW))
    bfc4 = jnp.tile(bfc, (1, PACK))

    grid = (n_pad // sb,)
    out_packed = pl.pallas_call(
        feature_generator_kernel,
        out_shape=jax.ShapeDtypeStruct((n_pad // PACK, PACK * D), jnp.float32),
        grid_spec=pltpu.PrefetchScalarGridSpec(
            num_scalar_prefetch=0,
            grid=grid,
            in_specs=[
                pl.BlockSpec((sb * HW, K_IM2COL), lambda i: (i, 0)),
                pl.BlockSpec((K_IM2COL, F_CH), lambda i: (0, 0)),
                pl.BlockSpec((1, F_CH), lambda i: (0, 0)),
                pl.BlockSpec((PACK * F_CH, PACK * D), lambda i: (0, 0)),
                pl.BlockSpec((1, PACK * D), lambda i: (0, 0)),
            ],
            out_specs=pl.BlockSpec((sb // PACK, PACK * D), lambda i: (i, 0)),
            scratch_shapes=[pltpu.VMEM((sb, F_CH), jnp.float32)],
        ),
        compiler_params=pltpu.CompilerParams(
            dimension_semantics=("parallel",),
            vmem_limit_bytes=32 * 1024 * 1024,
        ),
    )(patches, wconv_flat, bconv, wfc4, bfc4)

    # Unpack: block g, packed row r, lane group j  ->  sample g*sb + j*sb4 + r.
    g = n_pad // sb
    feats = out_packed.reshape(g, sb // PACK, PACK, D)
    feats = jnp.transpose(feats, (0, 2, 1, 3)).reshape(n_pad, D)
    return feats[:n]


def init_params(key):
    k1, k2, k3, k4 = jax.random.split(key, 4)
    wconv = 0.1 * jax.random.normal(k1, (9, C, F_CH), jnp.float32)   # 3x3 taps
    bconv = 0.01 * jax.random.normal(k2, (1, F_CH), jnp.float32)
    wfc = 0.1 * jax.random.normal(k3, (F_CH, D), jnp.float32)
    bfc = 0.01 * jax.random.normal(k4, (1, D), jnp.float32)
    return (wconv, bconv, wfc, bfc)


def model_forward(params, x_s, x_t, y_s):
    """
    x_s: [batch, n_pair, C, H, W]
    x_t: [batch, C, H, W]
    y_s: [batch, n_pair]
    returns (f_s, f_t) exactly as the PyTorch forward does.
    """
    b, p = x_s.shape[0], x_s.shape[1]
    # One kernel launch for both the source pairs and the target batch.
    x_all = jnp.concatenate([x_s.reshape(b * p, C, H, W), x_t], axis=0)
    f_all = feature_generator(x_all, params)                   # [b*p + b, D]
    f_s = f_all[: b * p].reshape(b, p, D)
    f_t = f_all[b * p:]
    # TODO(synk): FeatureTransfer / DomainDiscriminator loss branch in the
    # reference forward uses undefined symbols (d2_s, d2_f, lambda_1, lambda2)
    # and a verify_loss that cannot execute as written; only the returned
    # (f_s, f_t) path is implemented.
    return f_s, f_t


if __name__ == "__main__":
    key = jax.random.PRNGKey(0)
    kp, kx1, kx2, ky = jax.random.split(key, 4)

    batch, n_pair = 2, 3
    params = init_params(kp)
    x_s = jax.random.normal(kx1, (batch, n_pair, C, H, W), jnp.float32)
    x_t = jax.random.normal(kx2, (batch, C, H, W), jnp.float32)
    y_s = jax.random.bernoulli(ky, 0.5, (batch, n_pair)).astype(jnp.float32)

    f_s, f_t = model_forward(params, x_s, x_t, y_s)
    jax.block_until_ready((f_s, f_t))

    assert f_s.shape == (batch, n_pair, D)
    assert f_t.shape == (batch, D)

    # Sanity check against a pure-JAX f32 reference of the same FeatureGenerator.
    def ref_fg(x_nchw, params):
        wconv, bconv, wfc, bfc = params
        x = jnp.transpose(x_nchw, (0, 2, 3, 1))
        w4 = wconv.reshape(3, 3, C, F_CH)
        y = jax.lax.conv_general_dilated(
            x, w4, window_strides=(1, 1), padding="SAME",
            dimension_numbers=("NHWC", "HWIO", "NHWC"))
        y = jnp.maximum(y + bconv[0], 0.0)
        pooled = y.mean(axis=(1, 2))
        return pooled @ wfc + bfc[0]

    ref_t = ref_fg(x_t, params)
    ref_s = ref_fg(x_s.reshape(batch * n_pair, C, H, W),
                   params).reshape(batch, n_pair, D)
    # Conv operands are bf16 (f32 accumulation) -> looser tolerance than f32.
    assert jnp.allclose(f_t, ref_t, atol=2e-2, rtol=2e-2)
    assert jnp.allclose(f_s, ref_s, atol=2e-2, rtol=2e-2)

    print("KERNEL_OK")
</pallas_src>

<mosaic_0001>
module attributes {stable_mosaic.version = 11 : i64} {
  func.func @feature_generator_kernel(%arg0: i32, %arg1: memref<2048x36xbf16, #tpu.memory_space<vmem>>, %arg2: memref<36x32xbf16, #tpu.memory_space<vmem>>, %arg3: memref<1x32xf32, #tpu.memory_space<vmem>>, %arg4: memref<128x128xf32, #tpu.memory_space<vmem>>, %arg5: memref<1x128xf32, #tpu.memory_space<vmem>>, %arg6: memref<2x128xf32, #tpu.memory_space<vmem>>, %arg7: memref<8x32xf32, #tpu.memory_space<vmem>>) attributes {dimension_semantics = [#tpu.dimension_semantics<parallel>], iteration_bounds = array<i64: 1>, scalar_prefetch = 0 : i64, scratch_operands = 1 : i64, tpu.core_type = #tpu.core_type<tc>, window_params = [{transform_indices = @transform_0, window_bounds = array<i64: 2048, 36>}, {pipeline_mode = #tpu.pipeline_mode<synchronous>, transform_indices = @transform_1, window_bounds = array<i64: 36, 32>}, {pipeline_mode = #tpu.pipeline_mode<synchronous>, transform_indices = @transform_2, window_bounds = array<i64: 1, 32>}, {pipeline_mode = #tpu.pipeline_mode<synchronous>, transform_indices = @transform_3, window_bounds = array<i64: 128, 128>}, {pipeline_mode = #tpu.pipeline_mode<synchronous>, transform_indices = @transform_4, window_bounds = array<i64: 1, 128>}, {transform_indices = @transform_5, window_bounds = array<i64: 2, 128>}]} {
    %c0 = arith.constant 0 : index
    %c0_0 = arith.constant 0 : index
    %0 = vector.load %arg2[%c0, %c0_0] : memref<36x32xbf16, #tpu.memory_space<vmem>>, vector<36x32xbf16>
    %c0_1 = arith.constant 0 : index
    %c0_2 = arith.constant 0 : index
    %1 = vector.load %arg3[%c0_1, %c0_2] : memref<1x32xf32, #tpu.memory_space<vmem>>, vector<1x32xf32>
    %2 = vector.shape_cast %1 : vector<1x32xf32> to vector<1x32xf32>
    %3 = vector.broadcast %2 : vector<1x32xf32> to vector<256x32xf32>
    %c0_i32 = arith.constant 0 : i32
    %c256_i32 = arith.constant 256 : i32
    %4 = arith.muli %c0_i32, %c256_i32 : i32
    %5 = tpu.assume_multiple %4, 256 : i32
    %6 = arith.index_cast %5 : i32 to index
    %c0_3 = arith.constant 0 : index
    %7 = vector.load %arg1[%6, %c0_3] : memref<2048x36xbf16, #tpu.memory_space<vmem>>, vector<256x36xbf16>
    %cst = arith.constant dense<0.000000e+00> : vector<256x32xf32>
    %8 = tpu.matmul %7, %0, %cst {dimension_numbers = #tpu.dot_dimension_numbers<[1], [0], [0], [1], [0, 0, 1, 1], [], []>} : vector<256x36xbf16>, vector<36x32xbf16>, vector<256x32xf32> -> vector<256x32xf32>
    %9 = arith.addf %8, %3 : vector<256x32xf32>
    %cst_4 = arith.constant 0.000000e+00 : f32
    %10 = vector.broadcast %cst_4 : f32 to vector<256x32xf32>
    %11 = arith.maximumf %9, %10 : vector<256x32xf32>
    %cst_5 = arith.constant dense<0.000000e+00> : vector<32xf32>
    %12 = vector.multi_reduction <add>, %11, %cst_5 [0] : vector<256x32xf32> to vector<32xf32>
    %13 = vector.shape_cast %12 : vector<32xf32> to vector<1x32xf32>
    %14 = arith.index_cast %c0_i32 : i32 to index
    %c0_6 = arith.constant 0 : index
    %15 = vector.load %arg7[%14, %c0_6] : memref<8x32xf32, #tpu.memory_space<vmem>>, vector<1x32xf32>
    tpu.vector_store %arg7[%14, %c0_6], %13 {strides = array<i32>} : memref<8x32xf32, #tpu.memory_space<vmem>>, vector<1x32xf32>,
    %c1_i32 = arith.constant 1 : i32
    %c256_i32_7 = arith.constant 256 : i32
    %16 = arith.muli %c1_i32, %c256_i32_7 : i32
    %17 = tpu.assume_multiple %16, 256 : i32
    %18 = arith.index_cast %17 : i32 to index
    %c0_8 = arith.constant 0 : index
    %19 = vector.load %arg1[%18, %c0_8] : memref<2048x36xbf16, #tpu.memory_space<vmem>>, vector<256x36xbf16>
    %cst_9 = arith.constant dense<0.000000e+00> : vector<256x32xf32>
    %20 = tpu.matmul %19, %0, %cst_9 {dimension_numbers = #tpu.dot_dimension_numbers<[1], [0], [0], [1], [0, 0, 1, 1], [], []>} : vector<256x36xbf16>, vector<36x32xbf16>, vector<256x32xf32> -> vector<256x32xf32>
    %21 = arith.addf %20, %3 : vector<256x32xf32>
    %cst_10 = arith.constant 0.000000e+00 : f32
    %22 = vector.broadcast %cst_10 : f32 to vector<256x32xf32>
    %23 = arith.maximumf %21, %22 : vector<256x32xf32>
    %cst_11 = arith.constant dense<0.000000e+00> : vector<32xf32>
    %24 = vector.multi_reduction <add>, %23, %cst_11 [0] : vector<256x32xf32> to vector<32xf32>
    %25 = vector.shape_cast %24 : vector<32xf32> to vector<1x32xf32>
    %26 = arith.index_cast %c1_i32 : i32 to index
    %c0_12 = arith.constant 0 : index
    %27 = vector.load %arg7[%26, %c0_12] : memref<8x32xf32, #tpu.memory_space<vmem>>, vector<1x32xf32>
    tpu.vector_store %arg7[%26, %c0_12], %25 {strides = array<i32>} : memref<8x32xf32, #tpu.memory_space<vmem>>, vector<1x32xf32>,
    %c2_i32 = arith.constant 2 : i32
    %c256_i32_13 = arith.constant 256 : i32
    %28 = arith.muli %c2_i32, %c256_i32_13 : i32
    %29 = tpu.assume_multiple %28, 256 : i32
    %30 = arith.index_cast %29 : i32 to index
    %c0_14 = arith.constant 0 : index
    %31 = vector.load %arg1[%30, %c0_14] : memref<2048x36xbf16, #tpu.memory_space<vmem>>, vector<256x36xbf16>
    %cst_15 = arith.constant dense<0.000000e+00> : vector<256x32xf32>
    %32 = tpu.matmul %31, %0, %cst_15 {dimension_numbers = #tpu.dot_dimension_numbers<[1], [0], [0], [1], [0, 0, 1, 1], [], []>} : vector<256x36xbf16>, vector<36x32xbf16>, vector<256x32xf32> -> vector<256x32xf32>
    %33 = arith.addf %32, %3 : vector<256x32xf32>
    %cst_16 = arith.constant 0.000000e+00 : f32
    %34 = vector.broadcast %cst_16 : f32 to vector<256x32xf32>
    %35 = arith.maximumf %33, %34 : vector<256x32xf32>
    %cst_17 = arith.constant dense<0.000000e+00> : vector<32xf32>
    %36 = vector.multi_reduction <add>, %35, %cst_17 [0] : vector<256x32xf32> to vector<32xf32>
    %37 = vector.shape_cast %36 : vector<32xf32> to vector<1x32xf32>
    %38 = arith.index_cast %c2_i32 : i32 to index
    %c0_18 = arith.constant 0 : index
    %39 = vector.load %arg7[%38, %c0_18] : memref<8x32xf32, #tpu.memory_space<vmem>>, vector<1x32xf32>
    tpu.vector_store %arg7[%38, %c0_18], %37 {strides = array<i32>} : memref<8x32xf32, #tpu.memory_space<vmem>>, vector<1x32xf32>,
    %c3_i32 = arith.constant 3 : i32
    %c256_i32_19 = arith.constant 256 : i32
    %40 = arith.muli %c3_i32, %c256_i32_19 : i32
    %41 = tpu.assume_multiple %40, 256 : i32
    %42 = arith.index_cast %41 : i32 to index
    %c0_20 = arith.constant 0 : index
    %43 = vector.load %arg1[%42, %c0_20] : memref<2048x36xbf16, #tpu.memory_space<vmem>>, vector<256x36xbf16>
    %cst_21 = arith.constant dense<0.000000e+00> : vector<256x32xf32>
    %44 = tpu.matmul %43, %0, %cst_21 {dimension_numbers = #tpu.dot_dimension_numbers<[1], [0], [0], [1], [0, 0, 1, 1], [], []>} : vector<256x36xbf16>, vector<36x32xbf16>, vector<256x32xf32> -> vector<256x32xf32>
    %45 = arith.addf %44, %3 : vector<256x32xf32>
    %cst_22 = arith.constant 0.000000e+00 : f32
    %46 = vector.broadcast %cst_22 : f32 to vector<256x32xf32>
    %47 = arith.maximumf %45, %46 : vector<256x32xf32>
    %cst_23 = arith.constant dense<0.000000e+00> : vector<32xf32>
    %48 = vector.multi_reduction <add>, %47, %cst_23 [0] : vector<256x32xf32> to vector<32xf32>
    %49 = vector.shape_cast %48 : vector<32xf32> to vector<1x32xf32>
    %50 = arith.index_cast %c3_i32 : i32 to index
    %c0_24 = arith.constant 0 : index
    %51 = vector.load %arg7[%50, %c0_24] : memref<8x32xf32, #tpu.memory_space<vmem>>, vector<1x32xf32>
    tpu.vector_store %arg7[%50, %c0_24], %49 {strides = array<i32>} : memref<8x32xf32, #tpu.memory_space<vmem>>, vector<1x32xf32>,
    %c4_i32 = arith.constant 4 : i32
    %c256_i32_25 = arith.constant 256 : i32
    %52 = arith.muli %c4_i32, %c256_i32_25 : i32
    %53 = tpu.assume_multiple %52, 256 : i32
    %54 = arith.index_cast %53 : i32 to index
    %c0_26 = arith.constant 0 : index
    %55 = vector.load %arg1[%54, %c0_26] : memref<2048x36xbf16, #tpu.memory_space<vmem>>, vector<256x36xbf16>
    %cst_27 = arith.constant dense<0.000000e+00> : vector<256x32xf32>
    %56 = tpu.matmul %55, %0, %cst_27 {dimension_numbers = #tpu.dot_dimension_numbers<[1], [0], [0], [1], [0, 0, 1, 1], [], []>} : vector<256x36xbf16>, vector<36x32xbf16>, vector<256x32xf32> -> vector<256x32xf32>
    %57 = arith.addf %56, %3 : vector<256x32xf32>
    %cst_28 = arith.constant 0.000000e+00 : f32
    %58 = vector.broadcast %cst_28 : f32 to vector<256x32xf32>
    %59 = arith.maximumf %57, %58 : vector<256x32xf32>
    %cst_29 = arith.constant dense<0.000000e+00> : vector<32xf32>
    %60 = vector.multi_reduction <add>, %59, %cst_29 [0] : vector<256x32xf32> to vector<32xf32>
    %61 = vector.shape_cast %60 : vector<32xf32> to vector<1x32xf32>
    %62 = arith.index_cast %c4_i32 : i32 to index
    %c0_30 = arith.constant 0 : index
    %63 = vector.load %arg7[%62, %c0_30] : memref<8x32xf32, #tpu.memory_space<vmem>>, vector<1x32xf32>
    tpu.vector_store %arg7[%62, %c0_30], %61 {strides = array<i32>} : memref<8x32xf32, #tpu.memory_space<vmem>>, vector<1x32xf32>,
    %c5_i32 = arith.constant 5 : i32
    %c256_i32_31 = arith.constant 256 : i32
    %64 = arith.muli %c5_i32, %c256_i32_31 : i32
    %65 = tpu.assume_multiple %64, 256 : i32
    %66 = arith.index_cast %65 : i32 to index
    %c0_32 = arith.constant 0 : index
    %67 = vector.load %arg1[%66, %c0_32] : memref<2048x36xbf16, #tpu.memory_space<vmem>>, vector<256x36xbf16>
    %cst_33 = arith.constant dense<0.000000e+00> : vector<256x32xf32>
    %68 = tpu.matmul %67, %0, %cst_33 {dimension_numbers = #tpu.dot_dimension_numbers<[1], [0], [0], [1], [0, 0, 1, 1], [], []>} : vector<256x36xbf16>, vector<36x32xbf16>, vector<256x32xf32> -> vector<256x32xf32>
    %69 = arith.addf %68, %3 : vector<256x32xf32>
    %cst_34 = arith.constant 0.000000e+00 : f32
    %70 = vector.broadcast %cst_34 : f32 to vector<256x32xf32>
    %71 = arith.maximumf %69, %70 : vector<256x32xf32>
    %cst_35 = arith.constant dense<0.000000e+00> : vector<32xf32>
    %72 = vector.multi_reduction <add>, %71, %cst_35 [0] : vector<256x32xf32> to vector<32xf32>
    %73 = vector.shape_cast %72 : vector<32xf32> to vector<1x32xf32>
    %74 = arith.index_cast %c5_i32 : i32 to index
    %c0_36 = arith.constant 0 : index
    %75 = vector.load %arg7[%74, %c0_36] : memref<8x32xf32, #tpu.memory_space<vmem>>, vector<1x32xf32>
    tpu.vector_store %arg7[%74, %c0_36], %73 {strides = array<i32>} : memref<8x32xf32, #tpu.memory_space<vmem>>, vector<1x32xf32>,
    %c6_i32 = arith.constant 6 : i32
    %c256_i32_37 = arith.constant 256 : i32
    %76 = arith.muli %c6_i32, %c256_i32_37 : i32
    %77 = tpu.assume_multiple %76, 256 : i32
    %78 = arith.index_cast %77 : i32 to index
    %c0_38 = arith.constant 0 : index
    %79 = vector.load %arg1[%78, %c0_38] : memref<2048x36xbf16, #tpu.memory_space<vmem>>, vector<256x36xbf16>
    %cst_39 = arith.constant dense<0.000000e+00> : vector<256x32xf32>
    %80 = tpu.matmul %79, %0, %cst_39 {dimension_numbers = #tpu.dot_dimension_numbers<[1], [0], [0], [1], [0, 0, 1, 1], [], []>} : vector<256x36xbf16>, vector<36x32xbf16>, vector<256x32xf32> -> vector<256x32xf32>
    %81 = arith.addf %80, %3 : vector<256x32xf32>
    %cst_40 = arith.constant 0.000000e+00 : f32
    %82 = vector.broadcast %cst_40 : f32 to vector<256x32xf32>
    %83 = arith.maximumf %81, %82 : vector<256x32xf32>
    %cst_41 = arith.constant dense<0.000000e+00> : vector<32xf32>
    %84 = vector.multi_reduction <add>, %83, %cst_41 [0] : vector<256x32xf32> to vector<32xf32>
    %85 = vector.shape_cast %84 : vector<32xf32> to vector<1x32xf32>
    %86 = arith.index_cast %c6_i32 : i32 to index
    %c0_42 = arith.constant 0 : index
    %87 = vector.load %arg7[%86, %c0_42] : memref<8x32xf32, #tpu.memory_space<vmem>>, vector<1x32xf32>
    tpu.vector_store %arg7[%86, %c0_42], %85 {strides = array<i32>} : memref<8x32xf32, #tpu.memory_space<vmem>>, vector<1x32xf32>,
    %c7_i32 = arith.constant 7 : i32
    %c256_i32_43 = arith.constant 256 : i32
    %88 = arith.muli %c7_i32, %c256_i32_43 : i32
    %89 = tpu.assume_multiple %88, 256 : i32
    %90 = arith.index_cast %89 : i32 to index
    %c0_44 = arith.constant 0 : index
    %91 = vector.load %arg1[%90, %c0_44] : memref<2048x36xbf16, #tpu.memory_space<vmem>>, vector<256x36xbf16>
    %cst_45 = arith.constant dense<0.000000e+00> : vector<256x32xf32>
    %92 = tpu.matmul %91, %0, %cst_45 {dimension_numbers = #tpu.dot_dimension_numbers<[1], [0], [0], [1], [0, 0, 1, 1], [], []>} : vector<256x36xbf16>, vector<36x32xbf16>, vector<256x32xf32> -> vector<256x32xf32>
    %93 = arith.addf %92, %3 : vector<256x32xf32>
    %cst_46 = arith.constant 0.000000e+00 : f32
    %94 = vector.broadcast %cst_46 : f32 to vector<256x32xf32>
    %95 = arith.maximumf %93, %94 : vector<256x32xf32>
    %cst_47 = arith.constant dense<0.000000e+00> : vector<32xf32>
    %96 = vector.multi_reduction <add>, %95, %cst_47 [0] : vector<256x32xf32> to vector<32xf32>
    %97 = vector.shape_cast %96 : vector<32xf32> to vector<1x32xf32>
    %98 = arith.index_cast %c7_i32 : i32 to index
    %c0_48 = arith.constant 0 : index
    %99 = vector.load %arg7[%98, %c0_48] : memref<8x32xf32, #tpu.memory_space<vmem>>, vector<1x32xf32>
    tpu.vector_store %arg7[%98, %c0_48], %97 {strides = array<i32>} : memref<8x32xf32, #tpu.memory_space<vmem>>, vector<1x32xf32>,
    %c8_i32 = arith.constant 8 : i32
    %c0_49 = arith.constant 0 : index
    %c0_50 = arith.constant 0 : index
    %100 = vector.load %arg7[%c0_49, %c0_50] : memref<8x32xf32, #tpu.memory_space<vmem>>, vector<2x32xf32>
    %c2 = arith.constant 2 : index
    %c0_51 = arith.constant 0 : index
    %101 = vector.load %arg7[%c2, %c0_51] : memref<8x32xf32, #tpu.memory_space<vmem>>, vector<2x32xf32>
    %c4 = arith.constant 4 : index
    %c0_52 = arith.constant 0 : index
    %102 = vector.load %arg7[%c4, %c0_52] : memref<8x32xf32, #tpu.memory_space<vmem>>, vector<2x32xf32>
    %c6 = arith.constant 6 : index
    %c0_53 = arith.constant 0 : index
    %103 = vector.load %arg7[%c6, %c0_53] : memref<8x32xf32, #tpu.memory_space<vmem>>, vector<2x32xf32>
    %104 = tpu.concatenate %100, %101, %102, %103 in 1 : vector<2x32xf32>, vector<2x32xf32>, vector<2x32xf32>, vector<2x32xf32> -> vector<2x128xf32>
    %c0_54 = arith.constant 0 : index
    %c0_55 = arith.constant 0 : index
    %105 = vector.load %arg4[%c0_54, %c0_55] : memref<128x128xf32, #tpu.memory_space<vmem>>, vector<128x128xf32>
    %cst_56 = arith.constant dense<0.000000e+00> : vector<2x128xf32>
    %106 = tpu.matmul %104, %105, %cst_56 {dimension_numbers = #tpu.dot_dimension_numbers<[1], [0], [0], [1], [0, 0, 1, 1], [], []>} : vector<2x128xf32>, vector<128x128xf32>, vector<2x128xf32> -> vector<2x128xf32>
    %c0_57 = arith.constant 0 : index
    %c0_58 = arith.constant 0 : index
    %107 = vector.load %arg5[%c0_57, %c0_58] : memref<1x128xf32, #tpu.memory_space<vmem>>, vector<1x128xf32>
    %108 = vector.broadcast %107 : vector<1x128xf32> to vector<2x128xf32>
    %109 = arith.addf %106, %108 : vector<2x128xf32>
    %c0_59 = arith.constant 0 : index
    %c0_60 = arith.constant 0 : index
    %110 = vector.load %arg6[%c0_59, %c0_60] : memref<2x128xf32, #tpu.memory_space<vmem>>, vector<2x128xf32>
    tpu.vector_store %arg6[%c0_59, %c0_60], %109 {strides = array<i32>} : memref<2x128xf32, #tpu.memory_space<vmem>>, vector<2x128xf32>,
    return
  }
  func.func @transform_0(%arg0: i32) -> (i32, i32) {
    %c0_i32 = arith.constant 0 : i32
    %c0_i32_0 = arith.constant 0 : i32
    return %arg0, %c0_i32 : i32, i32
  }
  func.func @transform_1(%arg0: i32) -> (i32, i32) {
    %c0_i32 = arith.constant 0 : i32
    %c0_i32_0 = arith.constant 0 : i32
    %c0_i32_1 = arith.constant 0 : i32
    return %c0_i32, %c0_i32_0 : i32, i32
  }
  func.func @transform_2(%arg0: i32) -> (i32, i32) {
    %c0_i32 = arith.constant 0 : i32
    %c0_i32_0 = arith.constant 0 : i32
    %c0_i32_1 = arith.constant 0 : i32
    return %c0_i32, %c0_i32_0 : i32, i32
  }
  func.func @transform_3(%arg0: i32) -> (i32, i32) {
    %c0_i32 = arith.constant 0 : i32
    %c0_i32_0 = arith.constant 0 : i32
    %c0_i32_1 = arith.constant 0 : i32
    return %c0_i32, %c0_i32_0 : i32, i32
  }
  func.func @transform_4(%arg0: i32) -> (i32, i32) {
    %c0_i32 = arith.constant 0 : i32
    %c0_i32_0 = arith.constant 0 : i32
    %c0_i32_1 = arith.constant 0 : i32
    return %c0_i32, %c0_i32_0 : i32, i32
  }
  func.func @transform_5(%arg0: i32) -> (i32, i32) {
    %c0_i32 = arith.constant 0 : i32
    %c0_i32_0 = arith.constant 0 : i32
    return %arg0, %c0_i32 : i32, i32
  }
}

</mosaic_0001>

<bundles_post_ra>
// kernel: tpu_custom_call.1
= control target key start
LH: loop header
LB: loop body
LE: loop exit
PB: predicated region body
PF: predicated region fallthrough
CT: control target
= control target key end

     0   :  { %vm207_vm0 = vcmask 1041408   ;;  %s5220_s0 = inlined_call_operand.vmem [shape: bf16[2048,36], index: 0, kind: input, shape index: {}]   ;;  %s5221_s1 = inlined_call_operand.vmem [shape: bf16[36,32], index: 1, kind: input, shape index: {}]   ;;  %s5222_s2 = inlined_call_operand.vmem [shape: f32[1,32], index: 2, kind: input, shape index: {}]   ;;  %s5223_s3 = inlined_call_operand.vmem [shape: f32[128,128], index: 3, kind: input, shape index: {}]   ;;  %s5224_s4 = inlined_call_operand.vmem [shape: f32[1,128], index: 4, kind: input, shape index: {}]   ;;  %s5225_s5 = inlined_call_operand.hbm [shape: f32[2,128], index: 5, kind: output, shape index: {}]  }
   0x1   :  { %v26_v0 = vld [vmem:[%s5221_s1 + $0x10] sm:$0x3] }
   0x2   :  { %v152_v1 = vunpack.c.l.b16 %v26_v0 }
   0x4   :  { %v155_v2 = vpack.c.b16 %v152_v1, %v152_v1 }
   0x5   :  { %10 = vsyncpa [#allocation4], 0  ;;  %v3819_v4 = vld [vmem:[%s5221_s1 + $0x8] sm:$0xff]  ;;  %v3818_v5 = vld [vmem:[%s5221_s1] sm:$0xff]  ;;  %vm158_vm1 = vcmask 293888   ;;  %vm332_vm2 = vcmask 261120  }
   0x6   :  { %v209_v3 = vsel %vm207_vm0, %v155_v2, 0  ;;  %v3820_v6 = vld [vmem:[%s5220_s0] sm:$0xff]  ;;  %v3821_v10 = vld [vmem:[%s5220_s0 + $0x8] sm:$0xff]  ;;  %v3822_v14 = vld [vmem:[%s5220_s0 + $0x10] sm:$0xff]  ;;  %vm402_vm3 = vcmask 253952   ;;  %s3982_s28 = smov 32  }
   0x7   :  { %216 = vmatpush.bf16.msra.mxu0 %v209_v3  ;;  %570 = vmatpush.bf16.msra.mxu1 %v209_v3  ;;  %v3836_v7 = vld [vmem:[%s5220_s0 + $0x80] sm:$0xff]  ;;  %v3837_v11 = vld [vmem:[%s5220_s0 + $0x88] sm:$0xff]  ;;  %v3838_v15 = vld [vmem:[%s5220_s0 + $0x90] sm:$0xff]  ;;  %s3984_s29 = smov 96   ;;  %vm2885_vm4 = vcmask 523264   ;;  %vm2887_vm5 = vcmask 785408  }
   0x8   :  { %922 = vmatpush.bf16.msra.mxu2 %v209_v3  ;;  %1274 = vmatpush.bf16.msra.mxu3 %v209_v3  ;;  %v3852_v8 = vld [vmem:[%s5220_s0 + $0x100] sm:$0xff]  ;;  %v3853_v12 = vld [vmem:[%s5220_s0 + $0x108] sm:$0xff]  ;;  %v3854_v16 = vld [vmem:[%s5220_s0 + $0x110] sm:$0xff]  ;;  %s3985_s1 = smov [#allocation3]   ;;  %s2937_s10 = sshll.u32 %s5225_s5, 4  ;;  %s2938_s10 = int_to_ptr.hbm [resolvable:$true] %s2937_s10 }
   0x9   :  { %v3868_v9 = vld [vmem:[%s5220_s0 + $0x180] sm:$0xff]  ;;  %v3869_v13 = vld [vmem:[%s5220_s0 + $0x188] sm:$0xff]  ;;  %v3870_v17 = vld [vmem:[%s5220_s0 + $0x190] sm:$0xff]  ;;  %s2935_s7 = sshll.u32 %s3985_s1, 4  ;;  %s2936_s7 = int_to_ptr.vmem [resolvable:$true] %s2935_s7 }
   0xa   :  { %v3823_v18 = vld [vmem:[%s5220_s0 + $0x18] sm:$0xff]  ;;  %v3824_v22 = vld [vmem:[%s5220_s0 + $0x20] sm:$0xff]  ;;  %v3825_v26 = vld [vmem:[%s5220_s0 + $0x28] sm:$0xff] }
   0xb   :  { %217 = vmatpush.bf16.msra.mxu0 %v3819_v4  ;;  %571 = vmatpush.bf16.msra.mxu1 %v3819_v4  ;;  %v3839_v19 = vld [vmem:[%s5220_s0 + $0x98] sm:$0xff]  ;;  %v3840_v23 = vld [vmem:[%s5220_s0 + $0xa0] sm:$0xff]  ;;  %v3841_v27 = vld [vmem:[%s5220_s0 + $0xa8] sm:$0xff] }
   0xc   :  { %923 = vmatpush.bf16.msra.mxu2 %v3819_v4  ;;  %1275 = vmatpush.bf16.msra.mxu3 %v3819_v4  ;;  %v3855_v20 = vld [vmem:[%s5220_s0 + $0x118] sm:$0xff]  ;;  %v3856_v24 = vld [vmem:[%s5220_s0 + $0x120] sm:$0xff]  ;;  %v3857_v28 = vld [vmem:[%s5220_s0 + $0x128] sm:$0xff] }
   0xd   :  { %v3871_v21 = vld [vmem:[%s5220_s0 + $0x198] sm:$0xff]  ;;  %v3872_v25 = vld [vmem:[%s5220_s0 + $0x1a0] sm:$0xff]  ;;  %v3873_v29 = vld [vmem:[%s5220_s0 + $0x1a8] sm:$0xff] }
   0xe   :  { %v3826_v30 = vld [vmem:[%s5220_s0 + $0x30] sm:$0xff]  ;;  %v3827_v34 = vld [vmem:[%s5220_s0 + $0x38] sm:$0xff]  ;;  %v3828_v38 = vld [vmem:[%s5220_s0 + $0x40] sm:$0xff] }
   0xf   :  { %218 = vmatpush.bf16.msra.mxu0 %v3818_v5  ;;  %572 = vmatpush.bf16.msra.mxu1 %v3818_v5  ;;  %v3842_v31 = vld [vmem:[%s5220_s0 + $0xb0] sm:$0xff]  ;;  %v3843_v35 = vld [vmem:[%s5220_s0 + $0xb8] sm:$0xff]  ;;  %v3844_v39 = vld [vmem:[%s5220_s0 + $0xc0] sm:$0xff] }
  0x10   :  { %924 = vmatpush.bf16.msra.mxu2 %v3818_v5  ;;  %1276 = vmatpush.bf16.msra.mxu3 %v3818_v5  ;;  %v3858_v32 = vld [vmem:[%s5220_s0 + $0x130] sm:$0xff]  ;;  %v3859_v36 = vld [vmem:[%s5220_s0 + $0x138] sm:$0xff]  ;;  %v3860_v42 = vld [vmem:[%s5220_s0 + $0x140] sm:$0xff] }
  0x11   :  { %v3874_v33 = vld [vmem:[%s5220_s0 + $0x1b0] sm:$0xff]  ;;  %v3875_v37 = vld [vmem:[%s5220_s0 + $0x1b8] sm:$0xff]  ;;  %v3876_v43 = vld [vmem:[%s5220_s0 + $0x1c0] sm:$0xff] }
  0x12   :  { %3018 = vmatmul.msk.bf16.vlgmr.msra.gmra.mxu0 %vm158_vm1, %v3820_v6  ;;  %3130 = vmatmul.msk.bf16.vlgmr.msra.gmra.mxu1 %vm158_vm1, %v3836_v7  ;;  %v4168_v44 = vld [vmem:[%s5222_s2] ss:$0 sm:$0xff] }
  0x13   :  { %3242 = vmatmul.msk.bf16.vlgmr.msra.gmra.mxu2 %vm158_vm1, %v3852_v8  ;;  %3354 = vmatmul.msk.bf16.vlgmr.msra.gmra.mxu3 %vm158_vm1, %v3868_v9 }
  0x14   :  { %2330 = vmatpush.bf16.msrb.mxu2 %v209_v3  ;;  %2682 = vmatpush.bf16.msrb.mxu3 %v209_v3 }
  0x15   :  { %1626 = vmatpush.bf16.msrb.mxu0 %v209_v3  ;;  %1978 = vmatpush.bf16.msrb.mxu1 %v209_v3  ;;  %v3829_v3 = vld [vmem:[%s5220_s0 + $0x48] sm:$0xff] }
  0x18   :  { %2331 = vmatpush.bf16.msrb.mxu2 %v3819_v4  ;;  %2683 = vmatpush.bf16.msrb.mxu3 %v3819_v4 }
  0x19   :  { %1627 = vmatpush.bf16.msrb.mxu0 %v3819_v4  ;;  %1979 = vmatpush.bf16.msrb.mxu1 %v3819_v4  ;;  %v3845_v4 = vld [vmem:[%s5220_s0 + $0xc8] sm:$0xff] }
  0x1c   :  { %2332 = vmatpush.bf16.msrb.mxu2 %v3818_v5  ;;  %2684 = vmatpush.bf16.msrb.mxu3 %v3818_v5 }
  0x1d   :  { %1628 = vmatpush.bf16.msrb.mxu0 %v3818_v5  ;;  %1980 = vmatpush.bf16.msrb.mxu1 %v3818_v5 }
  0x22   :  { %3019 = vmatmul.msk.bf16.gmra.mxu0 %vm158_vm1, %v3821_v10  ;;  %3131 = vmatmul.msk.bf16.gmra.mxu1 %vm158_vm1, %v3837_v11  ;;  %v3861_v11 = vld [vmem:[%s5220_s0 + $0x148] sm:$0xff] }
  0x23   :  { %3243 = vmatmul.msk.bf16.gmra.mxu2 %vm158_vm1, %v3853_v12  ;;  %3355 = vmatmul.msk.bf16.gmra.mxu3 %vm158_vm1, %v3869_v13  ;;  %v3877_v12 = vld [vmem:[%s5220_s0 + $0x1c8] sm:$0xff] }
  0x32   :  { %3020 = vmatmul.msk.bf16.gmra.mxu0 %vm158_vm1, %v3822_v14  ;;  %3132 = vmatmul.msk.bf16.gmra.mxu1 %vm158_vm1, %v3838_v15 }
  0x33   :  { %3244 = vmatmul.msk.bf16.gmra.mxu2 %vm158_vm1, %v3854_v16  ;;  %3356 = vmatmul.msk.bf16.gmra.mxu3 %vm158_vm1, %v3870_v17 }
  0x42   :  { %3021 = vmatmul.msk.bf16.gmra.mxu0 %vm158_vm1, %v3823_v18  ;;  %3133 = vmatmul.msk.bf16.gmra.mxu1 %vm158_vm1, %v3839_v19 }
  0x43   :  { %3245 = vmatmul.msk.bf16.gmra.mxu2 %vm158_vm1, %v3855_v20  ;;  %3357 = vmatmul.msk.bf16.gmra.mxu3 %vm158_vm1, %v3871_v21 }
  0x52   :  { %3022 = vmatmul.msk.bf16.gmra.mxu0 %vm158_vm1, %v3824_v22  ;;  %3134 = vmatmul.msk.bf16.gmra.mxu1 %vm158_vm1, %v3840_v23 }
  0x53   :  { %3246 = vmatmul.msk.bf16.gmra.mxu2 %vm158_vm1, %v3856_v24  ;;  %3358 = vmatmul.msk.bf16.gmra.mxu3 %vm158_vm1, %v3872_v25 }
  0x62   :  { %3023 = vmatmul.msk.bf16.gmra.mxu0 %vm158_vm1, %v3825_v26  ;;  %3135 = vmatmul.msk.bf16.gmra.mxu1 %vm158_vm1, %v3841_v27 }
  0x63   :  { %3247 = vmatmul.msk.bf16.gmra.mxu2 %vm158_vm1, %v3857_v28  ;;  %3359 = vmatmul.msk.bf16.gmra.mxu3 %vm158_vm1, %v3873_v29 }
  0x72   :  { %3024 = vmatmul.msk.bf16.gmra.mxu0 %vm158_vm1, %v3826_v30  ;;  %3136 = vmatmul.msk.bf16.gmra.mxu1 %vm158_vm1, %v3842_v31 }
  0x73   :  { %3248 = vmatmul.msk.bf16.gmra.mxu2 %vm158_vm1, %v3858_v32  ;;  %3360 = vmatmul.msk.bf16.gmra.mxu3 %vm158_vm1, %v3874_v33 }
  0x82   :  { %3025 = vmatmul.msk.bf16.gmra.mxu0 %vm158_vm1, %v3827_v34  ;;  %3137 = vmatmul.msk.bf16.gmra.mxu1 %vm158_vm1, %v3843_v35 }
  0x83   :  { %3249 = vmatmul.msk.bf16.gmra.mxu2 %vm158_vm1, %v3859_v36  ;;  %3361 = vmatmul.msk.bf16.gmra.mxu3 %vm158_vm1, %v3875_v37 }
  0x8f   :  { %v220_v40 = vpop.f32.mrf.mxu0  ;;  %v574_v41 = vpop.f32.mrf.mxu1 }
  0x90   :  { %v221_v45 = vadd.f32 %v4168_v44, %v220_v40  ;;  %v575_v46 = vadd.f32 %v4168_v44, %v574_v41 }
  0x92   :  { %3026 = vmatmul.msk.bf16.gmra.mxu0 %vm158_vm1, %v3828_v38  ;;  %3138 = vmatmul.msk.bf16.gmra.mxu1 %vm158_vm1, %v3844_v39  ;;  %v300_v51 = vmax.f32 %v221_v45, 0.0  ;;  %v654_v52 = vmax.f32 %v575_v46, 0.0 }
  0x93   :  { %3250 = vmatmul.msk.bf16.gmra.mxu2 %vm158_vm1, %v3860_v42  ;;  %3362 = vmatmul.msk.bf16.gmra.mxu3 %vm158_vm1, %v3876_v43 }
  0x94   :  { %v333_v59 = vsel %vm332_vm2, %v300_v51, 0.0  ;;  %v686_v60 = vsel %vm332_vm2, %v654_v52, 0.0  ;;  %v3830_v52 = vld [vmem:[%s5220_s0 + $0x50] sm:$0xff] }
  0x96   :  { %v926_v47 = vpop.f32.mrf.mxu2  ;;  %v1278_v48 = vpop.f32.mrf.mxu3 }
  0x97   :  { %v222_v49 = vpop.f32.mrf.mxu0  ;;  %v576_v50 = vpop.f32.mrf.mxu1  ;;  %v927_v57 = vadd.f32 %v4168_v44, %v926_v47  ;;  %v1279_v58 = vadd.f32 %v4168_v44, %v1278_v48 }
  0x98   :  { %v223_v53 = vadd.f32 %v4168_v44, %v222_v49  ;;  %v577_v54 = vadd.f32 %v4168_v44, %v576_v50 }
  0x99   :  { %v1006_v5 = vmax.f32 %v927_v57, 0.0  ;;  %v1358_v6 = vmax.f32 %v1279_v58, 0.0  ;;  %v3862_v58 = vld [vmem:[%s5220_s0 + $0x150] sm:$0xff] }
  0x9a   :  { %v301_v55 = vmax.f32 %v223_v53, 0.0  ;;  %v655_v56 = vmax.f32 %v577_v54, 0.0  ;;  %v3846_v53 = vld [vmem:[%s5220_s0 + $0xd0] sm:$0xff] }
  0x9b   :  { %v1038_v19 = vsel %vm332_vm2, %v1006_v5, 0.0  ;;  %v1390_v20 = vsel %vm332_vm2, %v1358_v6, 0.0 }
  0x9c   :  { %v334_v61 = vsel %vm332_vm2, %v301_v55, 0.0  ;;  %v687_v62 = vsel %vm332_vm2, %v655_v56, 0.0 }
  0x9d   :  { %v335_v63 = vadd.f32 %v334_v61, %v333_v59  ;;  %v688_v0 = vadd.f32 %v687_v62, %v686_v60  ;;  %v3878_v59 = vld [vmem:[%s5220_s0 + $0x1d0] sm:$0xff] }
  0x9e   :  { %v928_v1 = vpop.f32.mrf.mxu2  ;;  %v1280_v2 = vpop.f32.mrf.mxu3 }
  0x9f   :  { %v929_v7 = vadd.f32 %v4168_v44, %v928_v1  ;;  %v1281_v8 = vadd.f32 %v4168_v44, %v1280_v2  ;;  %v225_v9 = vpop.f32.mrf.mxu0  ;;  %v579_v10 = vpop.f32.mrf.mxu1 }
  0xa0   :  { %v226_v13 = vadd.f32 %v4168_v44, %v225_v9  ;;  %v580_v14 = vadd.f32 %v4168_v44, %v579_v10 }
  0xa1   :  { %v1007_v15 = vmax.f32 %v929_v7, 0.0  ;;  %v1359_v16 = vmax.f32 %v1281_v8, 0.0 }
  0xa2   :  { %v302_v17 = vmax.f32 %v226_v13, 0.0  ;;  %v656_v18 = vmax.f32 %v580_v14, 0.0  ;;  %3027 = vmatmul.msk.bf16.gmra.mxu0 %vm158_vm1, %v3829_v3  ;;  %3139 = vmatmul.msk.bf16.gmra.mxu1 %vm158_vm1, %v3845_v4 }
  0xa3   :  { %v1039_v21 = vsel %vm332_vm2, %v1007_v15, 0.0  ;;  %v1391_v22 = vsel %vm332_vm2, %v1359_v16, 0.0  ;;  %3251 = vmatmul.msk.bf16.gmra.mxu2 %vm158_vm1, %v3861_v11  ;;  %3363 = vmatmul.msk.bf16.gmra.mxu3 %vm158_vm1, %v3877_v12 }
  0xa4   :  { %v1040_v23 = vadd.f32 %v1039_v21, %v1038_v19  ;;  %v1392_v24 = vadd.f32 %v1391_v22, %v1390_v20  ;;  %v336_v25 = vsel %vm332_vm2, %v302_v17, 0.0  ;;  %v689_v26 = vsel %vm332_vm2, %v656_v18, 0.0 }
  0xa5   :  { %v337_v27 = vadd.f32 %v336_v25, %v335_v63  ;;  %v690_v28 = vadd.f32 %v689_v26, %v688_v0 }
  0xa6   :  { %v931_v29 = vpop.f32.mrf.mxu2  ;;  %v1283_v30 = vpop.f32.mrf.mxu3 }
  0xa7   :  { %v932_v31 = vadd.f32 %v4168_v44, %v931_v29  ;;  %v1284_v32 = vadd.f32 %v4168_v44, %v1283_v30  ;;  %v227_v33 = vpop.f32.mrf.mxu0  ;;  %v581_v34 = vpop.f32.mrf.mxu1 }
  0xa8   :  { %v228_v35 = vadd.f32 %v4168_v44, %v227_v33  ;;  %v582_v36 = vadd.f32 %v4168_v44, %v581_v34  ;;  %v3847_v33 = vld [vmem:[%s5220_s0 + $0xd8] sm:$0xff] }
  0xa9   :  { %v1008_v37 = vmax.f32 %v932_v31, 0.0  ;;  %v1360_v38 = vmax.f32 %v1284_v32, 0.0  ;;  %v3831_v32 = vld [vmem:[%s5220_s0 + $0x58] sm:$0xff] }
  0xaa   :  { %v303_v39 = vmax.f32 %v228_v35, 0.0  ;;  %v657_v40 = vmax.f32 %v582_v36, 0.0 }
  0xab   :  { %v1041_v41 = vsel %vm332_vm2, %v1008_v37, 0.0  ;;  %v1393_v42 = vsel %vm332_vm2, %v1360_v38, 0.0  ;;  %v3863_v38 = vld [vmem:[%s5220_s0 + $0x158] sm:$0xff] }
  0xac   :  { %v1042_v43 = vadd.f32 %v1041_v41, %v1040_v23  ;;  %v1394_v45 = vadd.f32 %v1393_v42, %v1392_v24  ;;  %v338_v46 = vsel %vm332_vm2, %v303_v39, 0.0  ;;  %v691_v47 = vsel %vm332_vm2, %v657_v40, 0.0  ;;  %v3879_v39 = vld [vmem:[%s5220_s0 + $0x1d8] sm:$0xff] }
  0xad   :  { %v339_v48 = vadd.f32 %v338_v46, %v337_v27  ;;  %v692_v49 = vadd.f32 %v691_v47, %v690_v28 }
  0xae   :  { %v933_v50 = vpop.f32.mrf.mxu2  ;;  %v1285_v51 = vpop.f32.mrf.mxu3 }
  0xaf   :  { %v934_v54 = vadd.f32 %v4168_v44, %v933_v50  ;;  %v1286_v55 = vadd.f32 %v4168_v44, %v1285_v51  ;;  %v230_v56 = vpop.f32.mrf.mxu0  ;;  %v584_v57 = vpop.f32.mrf.mxu1 }
  0xb0   :  { %v231_v60 = vadd.f32 %v4168_v44, %v230_v56  ;;  %v585_v61 = vadd.f32 %v4168_v44, %v584_v57 }
  0xb1   :  { %v1009_v62 = vmax.f32 %v934_v54, 0.0  ;;  %v1361_v63 = vmax.f32 %v1286_v55, 0.0 }
  0xb2   :  { %v304_v0 = vmax.f32 %v231_v60, 0.0  ;;  %v658_v1 = vmax.f32 %v585_v61, 0.0  ;;  %3028 = vmatmul.msk.bf16.gmra.mxu0 %vm158_vm1, %v3830_v52  ;;  %3140 = vmatmul.msk.bf16.gmra.mxu1 %vm158_vm1, %v3846_v53 }
  0xb3   :  { %v1043_v2 = vsel %vm332_vm2, %v1009_v62, 0.0  ;;  %v1395_v3 = vsel %vm332_vm2, %v1361_v63, 0.0  ;;  %3252 = vmatmul.msk.bf16.gmra.mxu2 %vm158_vm1, %v3862_v58  ;;  %3364 = vmatmul.msk.bf16.gmra.mxu3 %vm158_vm1, %v3878_v59 }
  0xb4   :  { %v1044_v4 = vadd.f32 %v1043_v2, %v1042_v43  ;;  %v1396_v5 = vadd.f32 %v1395_v3, %v1394_v45  ;;  %v340_v6 = vsel %vm332_vm2, %v304_v0, 0.0  ;;  %v693_v7 = vsel %vm332_vm2, %v658_v1, 0.0 }
  0xb5   :  { %v341_v8 = vadd.f32 %v340_v6, %v339_v48  ;;  %v694_v9 = vadd.f32 %v693_v7, %v692_v49 }
  0xb6   :  { %v936_v10 = vpop.f32.mrf.mxu2  ;;  %v1288_v11 = vpop.f32.mrf.mxu3 }
  0xb7   :  { %v937_v12 = vadd.f32 %v4168_v44, %v936_v10  ;;  %v1289_v13 = vadd.f32 %v4168_v44, %v1288_v11  ;;  %v232_v14 = vpop.f32.mrf.mxu0  ;;  %v586_v15 = vpop.f32.mrf.mxu1 }
  0xb8   :  { %v233_v16 = vadd.f32 %v4168_v44, %v232_v14  ;;  %v587_v17 = vadd.f32 %v4168_v44, %v586_v15  ;;  %v3848_v14 = vld [vmem:[%s5220_s0 + $0xe0] sm:$0xff] }
  0xb9   :  { %v1010_v18 = vmax.f32 %v937_v12, 0.0  ;;  %v1362_v19 = vmax.f32 %v1289_v13, 0.0  ;;  %v3832_v13 = vld [vmem:[%s5220_s0 + $0x60] sm:$0xff] }
  0xba   :  { %v305_v20 = vmax.f32 %v233_v16, 0.0  ;;  %v659_v21 = vmax.f32 %v587_v17, 0.0 }
  0xbb   :  { %v1045_v22 = vsel %vm332_vm2, %v1010_v18, 0.0  ;;  %v1397_v23 = vsel %vm332_vm2, %v1362_v19, 0.0  ;;  %v3864_v19 = vld [vmem:[%s5220_s0 + $0x160] sm:$0xff] }
  0xbc   :  { %v1046_v24 = vadd.f32 %v1045_v22, %v1044_v4  ;;  %v1398_v25 = vadd.f32 %v1397_v23, %v1396_v5  ;;  %v342_v26 = vsel %vm332_vm2, %v305_v20, 0.0  ;;  %v695_v27 = vsel %vm332_vm2, %v659_v21, 0.0  ;;  %v3880_v20 = vld [vmem:[%s5220_s0 + $0x1e0] sm:$0xff] }
  0xbd   :  { %v343_v28 = vadd.f32 %v342_v26, %v341_v8  ;;  %v696_v29 = vadd.f32 %v695_v27, %v694_v9 }
  0xbe   :  { %v938_v30 = vpop.f32.mrf.mxu2  ;;  %v1290_v31 = vpop.f32.mrf.mxu3 }
  0xbf   :  { %v939_v34 = vadd.f32 %v4168_v44, %v938_v30  ;;  %v1291_v35 = vadd.f32 %v4168_v44, %v1290_v31  ;;  %v235_v36 = vpop.f32.mrf.mxu0  ;;  %v589_v37 = vpop.f32.mrf.mxu1 }
  0xc0   :  { %v236_v40 = vadd.f32 %v4168_v44, %v235_v36  ;;  %v590_v41 = vadd.f32 %v4168_v44, %v589_v37 }
  0xc1   :  { %v1011_v42 = vmax.f32 %v939_v34, 0.0  ;;  %v1363_v43 = vmax.f32 %v1291_v35, 0.0 }
  0xc2   :  { %v306_v45 = vmax.f32 %v236_v40, 0.0  ;;  %v660_v46 = vmax.f32 %v590_v41, 0.0  ;;  %3029 = vmatmul.msk.bf16.gmra.mxu0 %vm158_vm1, %v3831_v32  ;;  %3141 = vmatmul.msk.bf16.gmra.mxu1 %vm158_vm1, %v3847_v33 }
  0xc3   :  { %v1047_v47 = vsel %vm332_vm2, %v1011_v42, 0.0  ;;  %v1399_v48 = vsel %vm332_vm2, %v1363_v43, 0.0  ;;  %3253 = vmatmul.msk.bf16.gmra.mxu2 %vm158_vm1, %v3863_v38  ;;  %3365 = vmatmul.msk.bf16.gmra.mxu3 %vm158_vm1, %v3879_v39 }
  0xc4   :  { %v1048_v49 = vadd.f32 %v1047_v47, %v1046_v24  ;;  %v1400_v50 = vadd.f32 %v1399_v48, %v1398_v25  ;;  %v344_v51 = vsel %vm332_vm2, %v306_v45, 0.0  ;;  %v697_v52 = vsel %vm332_vm2, %v660_v46, 0.0 }
  0xc5   :  { %v345_v53 = vadd.f32 %v344_v51, %v343_v28  ;;  %v698_v54 = vadd.f32 %v697_v52, %v696_v29 }
  0xc6   :  { %v941_v55 = vpop.f32.mrf.mxu2  ;;  %v1293_v56 = vpop.f32.mrf.mxu3 }
  0xc7   :  { %v942_v57 = vadd.f32 %v4168_v44, %v941_v55  ;;  %v1294_v58 = vadd.f32 %v4168_v44, %v1293_v56  ;;  %v237_v59 = vpop.f32.mrf.mxu0  ;;  %v591_v60 = vpop.f32.mrf.mxu1 }
  0xc8   :  { %v238_v61 = vadd.f32 %v4168_v44, %v237_v59  ;;  %v592_v62 = vadd.f32 %v4168_v44, %v591_v60  ;;  %v3849_v59 = vld [vmem:[%s5220_s0 + $0xe8] sm:$0xff] }
  0xc9   :  { %v1012_v63 = vmax.f32 %v942_v57, 0.0  ;;  %v1364_v0 = vmax.f32 %v1294_v58, 0.0  ;;  %v3833_v58 = vld [vmem:[%s5220_s0 + $0x68] sm:$0xff] }
  0xca   :  { %v307_v1 = vmax.f32 %v238_v61, 0.0  ;;  %v661_v2 = vmax.f32 %v592_v62, 0.0 }
  0xcb   :  { %v1049_v3 = vsel %vm332_vm2, %v1012_v63, 0.0  ;;  %v1401_v4 = vsel %vm332_vm2, %v1364_v0, 0.0  ;;  %v3865_v0 = vld [vmem:[%s5220_s0 + $0x168] sm:$0xff] }
  0xcc   :  { %v1050_v5 = vadd.f32 %v1049_v3, %v1048_v49  ;;  %v1402_v6 = vadd.f32 %v1401_v4, %v1400_v50  ;;  %v346_v7 = vsel %vm332_vm2, %v307_v1, 0.0  ;;  %v699_v8 = vsel %vm332_vm2, %v661_v2, 0.0  ;;  %v3881_v1 = vld [vmem:[%s5220_s0 + $0x1e8] sm:$0xff] }
  0xcd   :  { %v347_v9 = vadd.f32 %v346_v7, %v345_v53  ;;  %v700_v10 = vadd.f32 %v699_v8, %v698_v54 }
  0xce   :  { %v943_v11 = vpop.f32.mrf.mxu2  ;;  %v1295_v12 = vpop.f32.mrf.mxu3 }
  0xcf   :  { %v944_v15 = vadd.f32 %v4168_v44, %v943_v11  ;;  %v1296_v16 = vadd.f32 %v4168_v44, %v1295_v12  ;;  %v240_v17 = vpop.f32.mrf.mxu0  ;;  %v594_v18 = vpop.f32.mrf.mxu1 }
  0xd0   :  { %v241_v21 = vadd.f32 %v4168_v44, %v240_v17  ;;  %v595_v22 = vadd.f32 %v4168_v44, %v594_v18 }
  0xd1   :  { %v1013_v23 = vmax.f32 %v944_v15, 0.0  ;;  %v1365_v24 = vmax.f32 %v1296_v16, 0.0 }
  0xd2   :  { %v308_v25 = vmax.f32 %v241_v21, 0.0  ;;  %v662_v26 = vmax.f32 %v595_v22, 0.0  ;;  %3030 = vmatmul.msk.bf16.gmra.mxu0 %vm158_vm1, %v3832_v13  ;;  %3142 = vmatmul.msk.bf16.gmra.mxu1 %vm158_vm1, %v3848_v14 }
  0xd3   :  { %v1051_v27 = vsel %vm332_vm2, %v1013_v23, 0.0  ;;  %v1403_v28 = vsel %vm332_vm2, %v1365_v24, 0.0  ;;  %3254 = vmatmul.msk.bf16.gmra.mxu2 %vm158_vm1, %v3864_v19  ;;  %3366 = vmatmul.msk.bf16.gmra.mxu3 %vm158_vm1, %v3880_v20 }
  0xd4   :  { %v1052_v29 = vadd.f32 %v1051_v27, %v1050_v5  ;;  %v1404_v30 = vadd.f32 %v1403_v28, %v1402_v6  ;;  %v348_v31 = vsel %vm332_vm2, %v308_v25, 0.0  ;;  %v701_v32 = vsel %vm332_vm2, %v662_v26, 0.0 }
  0xd5   :  { %v349_v33 = vadd.f32 %v348_v31, %v347_v9  ;;  %v702_v34 = vadd.f32 %v701_v32, %v700_v10 }
  0xd6   :  { %v946_v35 = vpop.f32.mrf.mxu2  ;;  %v1298_v36 = vpop.f32.mrf.mxu3 }
  0xd7   :  { %v947_v37 = vadd.f32 %v4168_v44, %v946_v35  ;;  %v1299_v38 = vadd.f32 %v4168_v44, %v1298_v36  ;;  %v242_v39 = vpop.f32.mrf.mxu0  ;;  %v596_v40 = vpop.f32.mrf.mxu1 }
  0xd8   :  { %v243_v41 = vadd.f32 %v4168_v44, %v242_v39  ;;  %v597_v42 = vadd.f32 %v4168_v44, %v596_v40  ;;  %v3850_v39 = vld [vmem:[%s5220_s0 + $0xf0] sm:$0xff] }
  0xd9   :  { %v1014_v43 = vmax.f32 %v947_v37, 0.0  ;;  %v1366_v45 = vmax.f32 %v1299_v38, 0.0  ;;  %v3834_v38 = vld [vmem:[%s5220_s0 + $0x70] sm:$0xff] }
  0xda   :  { %v309_v46 = vmax.f32 %v243_v41, 0.0  ;;  %v663_v47 = vmax.f32 %v597_v42, 0.0 }
  0xdb   :  { %v1053_v48 = vsel %vm332_vm2, %v1014_v43, 0.0  ;;  %v1405_v49 = vsel %vm332_vm2, %v1366_v45, 0.0  ;;  %v3866_v45 = vld [vmem:[%s5220_s0 + $0x170] sm:$0xff] }
  0xdc   :  { %v1054_v50 = vadd.f32 %v1053_v48, %v1052_v29  ;;  %v1406_v51 = vadd.f32 %v1405_v49, %v1404_v30  ;;  %v350_v52 = vsel %vm332_vm2, %v309_v46, 0.0  ;;  %v703_v53 = vsel %vm332_vm2, %v663_v47, 0.0  ;;  %v3882_v46 = vld [vmem:[%s5220_s0 + $0x1f0] sm:$0xff] }
  0xdd   :  { %v351_v54 = vadd.f32 %v350_v52, %v349_v33  ;;  %v704_v55 = vadd.f32 %v703_v53, %v702_v34 }
  0xde   :  { %v948_v56 = vpop.f32.mrf.mxu2  ;;  %v1300_v57 = vpop.f32.mrf.mxu3 }
  0xdf   :  { %v949_v60 = vadd.f32 %v4168_v44, %v948_v56  ;;  %v1301_v61 = vadd.f32 %v4168_v44, %v1300_v57  ;;  %v245_v62 = vpop.f32.mrf.mxu0  ;;  %v599_v63 = vpop.f32.mrf.mxu1 }
  0xe0   :  { %v246_v2 = vadd.f32 %v4168_v44, %v245_v62  ;;  %v600_v3 = vadd.f32 %v4168_v44, %v599_v63 }
  0xe1   :  { %v1015_v4 = vmax.f32 %v949_v60, 0.0  ;;  %v1367_v5 = vmax.f32 %v1301_v61, 0.0 }
  0xe2   :  { %v310_v6 = vmax.f32 %v246_v2, 0.0  ;;  %v664_v7 = vmax.f32 %v600_v3, 0.0  ;;  %3031 = vmatmul.msk.bf16.gmra.mxu0 %vm158_vm1, %v3833_v58  ;;  %3143 = vmatmul.msk.bf16.gmra.mxu1 %vm158_vm1, %v3849_v59 }
  0xe3   :  { %v1055_v8 = vsel %vm332_vm2, %v1015_v4, 0.0  ;;  %v1407_v9 = vsel %vm332_vm2, %v1367_v5, 0.0  ;;  %3255 = vmatmul.msk.bf16.gmra.mxu2 %vm158_vm1, %v3865_v0  ;;  %3367 = vmatmul.msk.bf16.gmra.mxu3 %vm158_vm1, %v3881_v1 }
  0xe4   :  { %v1056_v10 = vadd.f32 %v1055_v8, %v1054_v50  ;;  %v1408_v11 = vadd.f32 %v1407_v9, %v1406_v51  ;;  %v352_v12 = vsel %vm332_vm2, %v310_v6, 0.0  ;;  %v705_v13 = vsel %vm332_vm2, %v664_v7, 0.0 }
  0xe5   :  { %v353_v14 = vadd.f32 %v352_v12, %v351_v54  ;;  %v706_v15 = vadd.f32 %v705_v13, %v704_v55 }
  0xe6   :  { %v951_v16 = vpop.f32.mrf.mxu2  ;;  %v1303_v17 = vpop.f32.mrf.mxu3 }
  0xe7   :  { %v952_v18 = vadd.f32 %v4168_v44, %v951_v16  ;;  %v1304_v19 = vadd.f32 %v4168_v44, %v1303_v17  ;;  %v247_v20 = vpop.f32.mrf.mxu0  ;;  %v601_v21 = vpop.f32.mrf.mxu1 }
  0xe8   :  { %v248_v22 = vadd.f32 %v4168_v44, %v247_v20  ;;  %v602_v23 = vadd.f32 %v4168_v44, %v601_v21  ;;  %v3851_v20 = vld [vmem:[%s5220_s0 + $0xf8] sm:$0xff] }
  0xe9   :  { %v1016_v24 = vmax.f32 %v952_v18, 0.0  ;;  %v1368_v25 = vmax.f32 %v1304_v19, 0.0  ;;  %v3835_v19 = vld [vmem:[%s5220_s0 + $0x78] sm:$0xff] }
  0xea   :  { %v311_v26 = vmax.f32 %v248_v22, 0.0  ;;  %v665_v27 = vmax.f32 %v602_v23, 0.0 }
  0xeb   :  { %v1057_v28 = vsel %vm332_vm2, %v1016_v24, 0.0  ;;  %v1409_v29 = vsel %vm332_vm2, %v1368_v25, 0.0  ;;  %v3867_v25 = vld [vmem:[%s5220_s0 + $0x178] sm:$0xff] }
  0xec   :  { %v1058_v30 = vadd.f32 %v1057_v28, %v1056_v10  ;;  %v1410_v31 = vadd.f32 %v1409_v29, %v1408_v11  ;;  %v354_v32 = vsel %vm332_vm2, %v311_v26, 0.0  ;;  %v707_v33 = vsel %vm332_vm2, %v665_v27, 0.0  ;;  %v3883_v26 = vld [vmem:[%s5220_s0 + $0x1f8] sm:$0xff] }
  0xed   :  { %v355_v34 = vadd.f32 %v354_v32, %v353_v14  ;;  %v708_v35 = vadd.f32 %v707_v33, %v706_v15 }
  0xee   :  { %v953_v36 = vpop.f32.mrf.mxu2  ;;  %v1305_v37 = vpop.f32.mrf.mxu3 }
  0xef   :  { %v954_v40 = vadd.f32 %v4168_v44, %v953_v36  ;;  %v1306_v41 = vadd.f32 %v4168_v44, %v1305_v37  ;;  %v250_v42 = vpop.f32.mrf.mxu0  ;;  %v604_v43 = vpop.f32.mrf.mxu1 }
  0xf0   :  { %v251_v47 = vadd.f32 %v4168_v44, %v250_v42  ;;  %v605_v48 = vadd.f32 %v4168_v44, %v604_v43 }
  0xf1   :  { %v1017_v49 = vmax.f32 %v954_v40, 0.0  ;;  %v1369_v50 = vmax.f32 %v1306_v41, 0.0 }
  0xf2   :  { %v312_v51 = vmax.f32 %v251_v47, 0.0  ;;  %v666_v52 = vmax.f32 %v605_v48, 0.0  ;;  %3032 = vmatmul.msk.bf16.gmra.mxu0 %vm158_vm1, %v3834_v38  ;;  %3144 = vmatmul.msk.bf16.gmra.mxu1 %vm158_vm1, %v3850_v39 }
  0xf3   :  { %v1059_v53 = vsel %vm332_vm2, %v1017_v49, 0.0  ;;  %v1411_v54 = vsel %vm332_vm2, %v1369_v50, 0.0  ;;  %3256 = vmatmul.msk.bf16.gmra.mxu2 %vm158_vm1, %v3866_v45  ;;  %3368 = vmatmul.msk.bf16.gmra.mxu3 %vm158_vm1, %v3882_v46 }
  0xf4   :  { %v1060_v55 = vadd.f32 %v1059_v53, %v1058_v30  ;;  %v1412_v56 = vadd.f32 %v1411_v54, %v1410_v31  ;;  %v356_v57 = vsel %vm332_vm2, %v312_v51, 0.0  ;;  %v709_v58 = vsel %vm332_vm2, %v666_v52, 0.0 }
  0xf5   :  { %v357_v59 = vadd.f32 %v356_v57, %v355_v34  ;;  %v710_v60 = vadd.f32 %v709_v58, %v708_v35 }
  0xf6   :  { %v956_v61 = vpop.f32.mrf.mxu2  ;;  %v1308_v62 = vpop.f32.mrf.mxu3 }
  0xf7   :  { %v957_v63 = vadd.f32 %v4168_v44, %v956_v61  ;;  %v1309_v0 = vadd.f32 %v4168_v44, %v1308_v62  ;;  %v252_v1 = vpop.f32.mrf.mxu0  ;;  %v606_v2 = vpop.f32.mrf.mxu1 }
  0xf8   :  { %v253_v3 = vadd.f32 %v4168_v44, %v252_v1  ;;  %v607_v4 = vadd.f32 %v4168_v44, %v606_v2  ;;  %v3900_v1 = vld [vmem:[%s5220_s0 + $0x280] sm:$0xff] }
  0xf9   :  { %v1018_v5 = vmax.f32 %v957_v63, 0.0  ;;  %v1370_v6 = vmax.f32 %v1309_v0, 0.0  ;;  %v3884_v0 = vld [vmem:[%s5220_s0 + $0x200] sm:$0xff] }
  0xfa   :  { %v313_v7 = vmax.f32 %v253_v3, 0.0  ;;  %v667_v8 = vmax.f32 %v607_v4, 0.0 }
  0xfb   :  { %v1061_v9 = vsel %vm332_vm2, %v1018_v5, 0.0  ;;  %v1413_v10 = vsel %vm332_vm2, %v1370_v6, 0.0  ;;  %v3916_v6 = vld [vmem:[%s5220_s0 + $0x300] sm:$0xff] }
  0xfc   :  { %v1062_v11 = vadd.f32 %v1061_v9, %v1060_v55  ;;  %v1414_v12 = vadd.f32 %v1413_v10, %v1412_v56  ;;  %v358_v13 = vsel %vm332_vm2, %v313_v7, 0.0  ;;  %v711_v14 = vsel %vm332_vm2, %v667_v8, 0.0  ;;  %v3932_v7 = vld [vmem:[%s5220_s0 + $0x380] sm:$0xff] }
  0xfd   :  { %v359_v15 = vadd.f32 %v358_v13, %v357_v59  ;;  %v712_v16 = vadd.f32 %v711_v14, %v710_v60 }
  0xfe   :  { %v958_v17 = vpop.f32.mrf.mxu2  ;;  %v1310_v18 = vpop.f32.mrf.mxu3 }
  0xff   :  { %v959_v21 = vadd.f32 %v4168_v44, %v958_v17  ;;  %v1311_v22 = vadd.f32 %v4168_v44, %v1310_v18  ;;  %v255_v23 = vpop.f32.mrf.mxu0  ;;  %v609_v24 = vpop.f32.mrf.mxu1 }
 0x100   :  { %v256_v27 = vadd.f32 %v4168_v44, %v255_v23  ;;  %v610_v28 = vadd.f32 %v4168_v44, %v609_v24 }
 0x101   :  { %v1019_v29 = vmax.f32 %v959_v21, 0.0  ;;  %v1371_v30 = vmax.f32 %v1311_v22, 0.0 }
 0x102   :  { %v314_v31 = vmax.f32 %v256_v27, 0.0  ;;  %v668_v32 = vmax.f32 %v610_v28, 0.0  ;;  %3033 = vmatmul.msk.bf16.gmra.mxu0 %vm158_vm1, %v3835_v19  ;;  %3145 = vmatmul.msk.bf16.gmra.mxu1 %vm158_vm1, %v3851_v20 }
 0x103   :  { %v1063_v33 = vsel %vm332_vm2, %v1019_v29, 0.0  ;;  %v1415_v34 = vsel %vm332_vm2, %v1371_v30, 0.0  ;;  %3257 = vmatmul.msk.bf16.gmra.mxu2 %vm158_vm1, %v3867_v25  ;;  %3369 = vmatmul.msk.bf16.gmra.mxu3 %vm158_vm1, %v3883_v26 }
 0x104   :  { %v1064_v35 = vadd.f32 %v1063_v33, %v1062_v11  ;;  %v1416_v36 = vadd.f32 %v1415_v34, %v1414_v12  ;;  %v360_v37 = vsel %vm332_vm2, %v314_v31, 0.0  ;;  %v713_v38 = vsel %vm332_vm2, %v668_v32, 0.0 }
 0x105   :  { %v361_v39 = vadd.f32 %v360_v37, %v359_v15  ;;  %v714_v40 = vadd.f32 %v713_v38, %v712_v16 }
 0x106   :  { %v961_v41 = vpop.f32.mrf.mxu2  ;;  %v1313_v42 = vpop.f32.mrf.mxu3 }
 0x107   :  { %v962_v43 = vadd.f32 %v4168_v44, %v961_v41  ;;  %v1314_v45 = vadd.f32 %v4168_v44, %v1313_v42  ;;  %v257_v46 = vpop.f32.mrf.mxu0  ;;  %v611_v47 = vpop.f32.mrf.mxu1 }
 0x108   :  { %v258_v48 = vadd.f32 %v4168_v44, %v257_v46  ;;  %v612_v49 = vadd.f32 %v4168_v44, %v611_v47  ;;  %v3901_v46 = vld [vmem:[%s5220_s0 + $0x288] sm:$0xff] }
 0x109   :  { %v1020_v50 = vmax.f32 %v962_v43, 0.0  ;;  %v1372_v51 = vmax.f32 %v1314_v45, 0.0  ;;  %v3885_v45 = vld [vmem:[%s5220_s0 + $0x208] sm:$0xff] }
 0x10a   :  { %v315_v52 = vmax.f32 %v258_v48, 0.0  ;;  %v669_v53 = vmax.f32 %v612_v49, 0.0 }
 0x10b   :  { %v1065_v54 = vsel %vm332_vm2, %v1020_v50, 0.0  ;;  %v1417_v55 = vsel %vm332_vm2, %v1372_v51, 0.0  ;;  %v3917_v51 = vld [vmem:[%s5220_s0 + $0x308] sm:$0xff] }
 0x10c   :  { %v1066_v56 = vadd.f32 %v1065_v54, %v1064_v35  ;;  %v1418_v57 = vadd.f32 %v1417_v55, %v1416_v36  ;;  %v362_v58 = vsel %vm332_vm2, %v315_v52, 0.0  ;;  %v715_v59 = vsel %vm332_vm2, %v669_v53, 0.0  ;;  %v3933_v52 = vld [vmem:[%s5220_s0 + $0x388] sm:$0xff] }
 0x10d   :  { %v363_v60 = vadd.f32 %v362_v58, %v361_v39  ;;  %v716_v61 = vadd.f32 %v715_v59, %v714_v40 }
 0x10e   :  { %v963_v62 = vpop.f32.mrf.mxu2  ;;  %v1315_v63 = vpop.f32.mrf.mxu3 }
 0x10f   :  { %v964_v2 = vadd.f32 %v4168_v44, %v963_v62  ;;  %v1316_v3 = vadd.f32 %v4168_v44, %v1315_v63  ;;  %v260_v4 = vpop.f32.mrf.mxu0  ;;  %v614_v5 = vpop.f32.mrf.mxu1 }
 0x110   :  { %v261_v8 = vadd.f32 %v4168_v44, %v260_v4  ;;  %v615_v9 = vadd.f32 %v4168_v44, %v614_v5 }
 0x111   :  { %v1021_v10 = vmax.f32 %v964_v2, 0.0  ;;  %v1373_v11 = vmax.f32 %v1316_v3, 0.0 }
 0x112   :  { %v316_v12 = vmax.f32 %v261_v8, 0.0  ;;  %v670_v13 = vmax.f32 %v615_v9, 0.0  ;;  %3466 = vmatmul.msk.bf16.vlgmr.msrb.gmra.mxu0 %vm158_vm1, %v3884_v0  ;;  %3578 = vmatmul.msk.bf16.vlgmr.msrb.gmra.mxu1 %vm158_vm1, %v3900_v1 }
 0x113   :  { %v1067_v14 = vsel %vm332_vm2, %v1021_v10, 0.0  ;;  %v1419_v15 = vsel %vm332_vm2, %v1373_v11, 0.0  ;;  %3690 = vmatmul.msk.bf16.vlgmr.msrb.gmra.mxu2 %vm158_vm1, %v3916_v6  ;;  %3802 = vmatmul.msk.bf16.vlgmr.msrb.gmra.mxu3 %vm158_vm1, %v3932_v7 }
 0x114   :  { %v1068_v16 = vadd.f32 %v1067_v14, %v1066_v56  ;;  %v1420_v17 = vadd.f32 %v1419_v15, %v1418_v57  ;;  %v364_v18 = vsel %vm332_vm2, %v316_v12, 0.0  ;;  %v717_v19 = vsel %vm332_vm2, %v670_v13, 0.0 }
 0x115   :  { %v365_v20 = vadd.f32 %v364_v18, %v363_v60  ;;  %v718_v21 = vadd.f32 %v717_v19, %v716_v61 }
 0x116   :  { %v966_v22 = vpop.f32.mrf.mxu2  ;;  %v1318_v23 = vpop.f32.mrf.mxu3 }
 0x117   :  { %v967_v24 = vadd.f32 %v4168_v44, %v966_v22  ;;  %v1319_v25 = vadd.f32 %v4168_v44, %v1318_v23  ;;  %v262_v26 = vpop.f32.mrf.mxu0  ;;  %v616_v27 = vpop.f32.mrf.mxu1 }
 0x118   :  { %v263_v28 = vadd.f32 %v4168_v44, %v262_v26  ;;  %v617_v29 = vadd.f32 %v4168_v44, %v616_v27  ;;  %v3902_v26 = vld [vmem:[%s5220_s0 + $0x290] sm:$0xff] }
 0x119   :  { %v1022_v30 = vmax.f32 %v967_v24, 0.0  ;;  %v1374_v31 = vmax.f32 %v1319_v25, 0.0  ;;  %v3886_v25 = vld [vmem:[%s5220_s0 + $0x210] sm:$0xff] }
 0x11a   :  { %v317_v32 = vmax.f32 %v263_v28, 0.0  ;;  %v671_v33 = vmax.f32 %v617_v29, 0.0 }
 0x11b   :  { %v1069_v34 = vsel %vm332_vm2, %v1022_v30, 0.0  ;;  %v1421_v35 = vsel %vm332_vm2, %v1374_v31, 0.0  ;;  %v3918_v31 = vld [vmem:[%s5220_s0 + $0x310] sm:$0xff] }
 0x11c   :  { %v1070_v36 = vadd.f32 %v1069_v34, %v1068_v16  ;;  %v1422_v37 = vadd.f32 %v1421_v35, %v1420_v17  ;;  %v366_v38 = vsel %vm332_vm2, %v317_v32, 0.0  ;;  %v719_v39 = vsel %vm332_vm2, %v671_v33, 0.0  ;;  %v3934_v32 = vld [vmem:[%s5220_s0 + $0x390] sm:$0xff] }
 0x11d   :  { %v367_v40 = vadd.f32 %v366_v38, %v365_v20  ;;  %v720_v41 = vadd.f32 %v719_v39, %v718_v21 }
 0x11e   :  { %v968_v42 = vpop.f32.mrf.mxu2  ;;  %v1320_v43 = vpop.f32.mrf.mxu3 }
 0x11f   :  { %v969_v47 = vadd.f32 %v4168_v44, %v968_v42  ;;  %v1321_v48 = vadd.f32 %v4168_v44, %v1320_v43  ;;  %v265_v49 = vpop.f32.mrf.mxu0  ;;  %v619_v50 = vpop.f32.mrf.mxu1 }
 0x120   :  { %v266_v53 = vadd.f32 %v4168_v44, %v265_v49  ;;  %v620_v54 = vadd.f32 %v4168_v44, %v619_v50 }
 0x121   :  { %v1023_v55 = vmax.f32 %v969_v47, 0.0  ;;  %v1375_v56 = vmax.f32 %v1321_v48, 0.0 }
 0x122   :  { %v318_v57 = vmax.f32 %v266_v53, 0.0  ;;  %v672_v58 = vmax.f32 %v620_v54, 0.0  ;;  %3467 = vmatmul.msk.bf16.gmra.mxu0 %vm158_vm1, %v3885_v45  ;;  %3579 = vmatmul.msk.bf16.gmra.mxu1 %vm158_vm1, %v3901_v46 }
 0x123   :  { %v1071_v59 = vsel %vm332_vm2, %v1023_v55, 0.0  ;;  %v1423_v60 = vsel %vm332_vm2, %v1375_v56, 0.0  ;;  %3691 = vmatmul.msk.bf16.gmra.mxu2 %vm158_vm1, %v3917_v51  ;;  %3803 = vmatmul.msk.bf16.gmra.mxu3 %vm158_vm1, %v3933_v52 }
 0x124   :  { %v1072_v61 = vadd.f32 %v1071_v59, %v1070_v36  ;;  %v1424_v62 = vadd.f32 %v1423_v60, %v1422_v37  ;;  %v368_v63 = vsel %vm332_vm2, %v318_v57, 0.0  ;;  %v721_v0 = vsel %vm332_vm2, %v672_v58, 0.0 }
 0x125   :  { %v369_v1 = vadd.f32 %v368_v63, %v367_v40  ;;  %v722_v2 = vadd.f32 %v721_v0, %v720_v41 }
 0x126   :  { %v971_v3 = vpop.f32.mrf.mxu2  ;;  %v1323_v4 = vpop.f32.mrf.mxu3 }
 0x127   :  { %v972_v5 = vadd.f32 %v4168_v44, %v971_v3  ;;  %v1324_v6 = vadd.f32 %v4168_v44, %v1323_v4  ;;  %v267_v7 = vpop.f32.mrf.mxu0  ;;  %v621_v8 = vpop.f32.mrf.mxu1 }
 0x128   :  { %v268_v9 = vadd.f32 %v4168_v44, %v267_v7  ;;  %v622_v10 = vadd.f32 %v4168_v44, %v621_v8 }
 0x129   :  { %v1024_v11 = vmax.f32 %v972_v5, 0.0  ;;  %v1376_v12 = vmax.f32 %v1324_v6, 0.0 }
 0x12a   :  { %v319_v13 = vmax.f32 %v268_v9, 0.0  ;;  %v673_v14 = vmax.f32 %v622_v10, 0.0  ;;  %v3888_v9 = vld [vmem:[%s5220_s0 + $0x220] sm:$0xff] }
 0x12b   :  { %v1073_v15 = vsel %vm332_vm2, %v1024_v11, 0.0  ;;  %v1425_v16 = vsel %vm332_vm2, %v1376_v12, 0.0  ;;  %v3904_v10 = vld [vmem:[%s5220_s0 + $0x2a0] sm:$0xff] }
 0x12c   :  { %v1074_v17 = vadd.f32 %v1073_v15, %v1072_v61  ;;  %v1426_v18 = vadd.f32 %v1425_v16, %v1424_v62  ;;  %v370_v19 = vsel %vm332_vm2, %v319_v13, 0.0  ;;  %v723_v20 = vsel %vm332_vm2, %v673_v14, 0.0  ;;  %v3887_v62 = vld [vmem:[%s5220_s0 + $0x218] sm:$0xff]  ;;  %v3920_v13 = vld [vmem:[%s5220_s0 + $0x320] sm:$0xff] }
 0x12d   :  { %v371_v21 = vadd.f32 %v370_v19, %v369_v1  ;;  %v724_v22 = vadd.f32 %v723_v20, %v722_v2  ;;  %v3919_v1 = vld [vmem:[%s5220_s0 + $0x318] sm:$0xff]  ;;  %v3936_v14 = vld [vmem:[%s5220_s0 + $0x3a0] sm:$0xff] }
 0x12e   :  { %v973_v23 = vpop.f32.mrf.mxu2  ;;  %v1325_v24 = vpop.f32.mrf.mxu3  ;;  %v3935_v2 = vld [vmem:[%s5220_s0 + $0x398] sm:$0xff] }
 0x12f   :  { %v974_v27 = vadd.f32 %v4168_v44, %v973_v23  ;;  %v1326_v28 = vadd.f32 %v4168_v44, %v1325_v24  ;;  %v270_v29 = vpop.f32.mrf.mxu0  ;;  %v624_v30 = vpop.f32.mrf.mxu1  ;;  %v4561_v23 = vld [vmem:[%s5222_s2] ss:$0 sm:$0xff] }
 0x130   :  { %v271_v33 = vadd.f32 %v4168_v44, %v270_v29  ;;  %v625_v34 = vadd.f32 %v4168_v44, %v624_v30  ;;  %v3937_v29 = vld [vmem:[%s5220_s0 + $0x3a8] sm:$0xff] }
 0x131   :  { %v1025_v35 = vmax.f32 %v974_v27, 0.0  ;;  %v1377_v36 = vmax.f32 %v1326_v28, 0.0  ;;  %v3921_v28 = vld [vmem:[%s5220_s0 + $0x328] sm:$0xff] }
 0x132   :  { %v320_v37 = vmax.f32 %v271_v33, 0.0  ;;  %v674_v38 = vmax.f32 %v625_v34, 0.0  ;;  %3468 = vmatmul.msk.bf16.gmra.mxu0 %vm158_vm1, %v3886_v25  ;;  %3580 = vmatmul.msk.bf16.gmra.mxu1 %vm158_vm1, %v3902_v26 }
 0x133   :  { %v1075_v39 = vsel %vm332_vm2, %v1025_v35, 0.0  ;;  %v1427_v40 = vsel %vm332_vm2, %v1377_v36, 0.0  ;;  %3692 = vmatmul.msk.bf16.gmra.mxu2 %vm158_vm1, %v3918_v31  ;;  %3804 = vmatmul.msk.bf16.gmra.mxu3 %vm158_vm1, %v3934_v32 }
 0x134   :  { %v1076_v41 = vadd.f32 %v1075_v39, %v1074_v17  ;;  %v1428_v42 = vadd.f32 %v1427_v40, %v1426_v18  ;;  %v372_v43 = vsel %vm332_vm2, %v320_v37, 0.0  ;;  %v725_v45 = vsel %vm332_vm2, %v674_v38, 0.0 }
 0x135   :  { %v4498_v46 = vadd.f32 %v372_v43, %v371_v21  ;;  %v4500_v47 = vadd.f32 %v725_v45, %v724_v22  ;;  %v3889_v21 = vld [vmem:[%s5220_s0 + $0x228] sm:$0xff] }
 0x136   :  { %v976_v48 = vpop.f32.mrf.mxu2  ;;  %v1328_v49 = vpop.f32.mrf.mxu3  ;;  %v3905_v22 = vld [vmem:[%s5220_s0 + $0x2a8] sm:$0xff] }
 0x137   :  { %v977_v50 = vadd.f32 %v4168_v44, %v976_v48  ;;  %v1329_v51 = vadd.f32 %v4168_v44, %v1328_v49  ;;  %v272_v52 = vpop.f32.mrf.mxu0  ;;  %v626_v53 = vpop.f32.mrf.mxu1  ;;  %v3903_v44 = vld [vmem:[%s5220_s0 + $0x298] sm:$0xff] }
 0x138   :  { %v273_v24 = vadd.f32 %v4561_v23, %v272_v52  ;;  %v627_v25 = vadd.f32 %v4561_v23, %v626_v53 }
 0x139   :  { %v1026_v54 = vmax.f32 %v977_v50, 0.0  ;;  %v1378_v55 = vmax.f32 %v1329_v51, 0.0 }
 0x13a   :  { %v321_v31 = vmax.f32 %v273_v24, 0.0  ;;  %v675_v32 = vmax.f32 %v627_v25, 0.0  ;;  %v3938_v24 = vld [vmem:[%s5220_s0 + $0x3b0] sm:$0xff] }
 0x13b   :  { %v1077_v56 = vsel %vm332_vm2, %v1026_v54, 0.0  ;;  %v1429_v57 = vsel %vm332_vm2, %v1378_v55, 0.0 }
 0x13c   :  { %v4506_v58 = vadd.f32 %v1077_v56, %v1076_v41  ;;  %v4508_v59 = vadd.f32 %v1429_v57, %v1428_v42  ;;  %v374_v41 = vsel %vm332_vm2, %v321_v31, 0.0  ;;  %v727_v42 = vsel %vm332_vm2, %v675_v32, 0.0 }
 0x13e   :  { %v978_v60 = vpop.f32.mrf.mxu2  ;;  %v1330_v61 = vpop.f32.mrf.mxu3 }
 0x13f   :  { %v275_v63 = vpop.f32.mrf.mxu0  ;;  %v629_v0 = vpop.f32.mrf.mxu1  ;;  %v979_v30 = vadd.f32 %v4561_v23, %v978_v60  ;;  %v1331_v33 = vadd.f32 %v4561_v23, %v1330_v61  ;;  %v375_v60 = vadd.f32 %v374_v41, %v4498_v46  ;;  %v728_v61 = vadd.f32 %v727_v42, %v4500_v47 }
 0x140   :  { %v276_v34 = vadd.f32 %v4561_v23, %v275_v63  ;;  %v630_v36 = vadd.f32 %v4561_v23, %v629_v0 }
 0x141   :  { %v1027_v35 = vmax.f32 %v979_v30, 0.0  ;;  %v1379_v43 = vmax.f32 %v1331_v33, 0.0 }
 0x142   :  { %3469 = vmatmul.msk.bf16.gmra.mxu0 %vm158_vm1, %v3887_v62  ;;  %3581 = vmatmul.msk.bf16.gmra.mxu1 %vm158_vm1, %v3903_v44  ;;  %v322_v45 = vmax.f32 %v276_v34, 0.0  ;;  %v676_v51 = vmax.f32 %v630_v36, 0.0 }
 0x143   :  { %3693 = vmatmul.msk.bf16.gmra.mxu2 %vm158_vm1, %v3919_v1  ;;  %3805 = vmatmul.msk.bf16.gmra.mxu3 %vm158_vm1, %v3935_v2  ;;  %v1079_v50 = vsel %vm332_vm2, %v1027_v35, 0.0  ;;  %v1431_v44 = vsel %vm332_vm2, %v1379_v43, 0.0 }
 0x144   :  { %v1080_v62 = vadd.f32 %v1079_v50, %v4506_v58  ;;  %v376_v63 = vsel %vm332_vm2, %v322_v45, 0.0  ;;  %v729_v0 = vsel %vm332_vm2, %v676_v51, 0.0  ;;  %v1432_v47 = vadd.f32 %v1431_v44, %v4508_v59 }
 0x145   :  { %v730_v25 = vadd.f32 %v729_v0, %v728_v61 }
 0x146   :  { %v981_v3 = vpop.f32.mrf.mxu2  ;;  %v1333_v4 = vpop.f32.mrf.mxu3 }
 0x147   :  { %v277_v5 = vpop.f32.mrf.mxu0  ;;  %v631_v6 = vpop.f32.mrf.mxu1  ;;  %v982_v37 = vadd.f32 %v4561_v23, %v981_v3  ;;  %v1334_v38 = vadd.f32 %v4561_v23, %v1333_v4 }
 0x148   :  { %v278_v52 = vadd.f32 %v4561_v23, %v277_v5  ;;  %v632_v53 = vadd.f32 %v4561_v23, %v631_v6 }
 0x149   :  { %v1028_v54 = vmax.f32 %v982_v37, 0.0  ;;  %v1380_v55 = vmax.f32 %v1334_v38, 0.0 }
 0x14a   :  { %v323_v1 = vmax.f32 %v278_v52, 0.0  ;;  %v677_v2 = vmax.f32 %v632_v53, 0.0 }
 0x14b   :  { %v1081_v3 = vsel %vm332_vm2, %v1028_v54, 0.0  ;;  %v1433_v4 = vsel %vm332_vm2, %v1380_v55, 0.0 }
 0x14e   :  { %v983_v7 = vpop.f32.mrf.mxu2  ;;  %v1335_v8 = vpop.f32.mrf.mxu3 }
 0x14f   :  { %v280_v11 = vpop.f32.mrf.mxu0  ;;  %v634_v12 = vpop.f32.mrf.mxu1  ;;  %v984_v56 = vadd.f32 %v4561_v23, %v983_v7  ;;  %v1336_v57 = vadd.f32 %v4561_v23, %v1335_v8 }
 0x150   :  { %v281_v5 = vadd.f32 %v4561_v23, %v280_v11  ;;  %v635_v46 = vadd.f32 %v4561_v23, %v634_v12  ;;  %v3906_v11 = vld [vmem:[%s5220_s0 + $0x2b0] sm:$0xff] }
 0x151   :  { %v1029_v6 = vmax.f32 %v984_v56, 0.0  ;;  %v1381_v58 = vmax.f32 %v1336_v57, 0.0 }
 0x152   :  { %3470 = vmatmul.msk.bf16.gmra.mxu0 %vm158_vm1, %v3888_v9  ;;  %3582 = vmatmul.msk.bf16.gmra.mxu1 %vm158_vm1, %v3904_v10  ;;  %v3890_v10 = vld [vmem:[%s5220_s0 + $0x230] sm:$0xff]  ;;  %v324_v30 = vmax.f32 %v281_v5, 0.0  ;;  %v678_v31 = vmax.f32 %v635_v46, 0.0 }
 0x153   :  { %3694 = vmatmul.msk.bf16.gmra.mxu2 %vm158_vm1, %v3920_v13  ;;  %3806 = vmatmul.msk.bf16.gmra.mxu3 %vm158_vm1, %v3936_v14  ;;  %v377_v13 = vadd.f32 %v376_v63, %v375_v60  ;;  %v1083_v32 = vsel %vm332_vm2, %v1029_v6, 0.0  ;;  %v1435_v33 = vsel %vm332_vm2, %v1381_v58, 0.0 }
 0x154   :  { %v380_v51 = vsel %vm332_vm2, %v324_v30, 0.0  ;;  %v733_v52 = vsel %vm332_vm2, %v678_v31, 0.0 }
 0x156   :  { %v986_v15 = vpop.f32.mrf.mxu2  ;;  %v4542_v16 = vpop.f32.mrf.mxu3 }
 0x157   :  { %v4544_v17 = vpop.f32.mrf.mxu0  ;;  %v4546_v18 = vpop.f32.mrf.mxu1  ;;  %v987_v7 = vadd.f32 %v4561_v23, %v986_v15  ;;  %v1339_v59 = vadd.f32 %v4561_v23, %v4542_v16 }
 0x158   :  { %v283_v12 = vadd.f32 %v4561_v23, %v4544_v17  ;;  %v637_v14 = vadd.f32 %v4561_v23, %v4546_v18  ;;  %v378_v17 = vsel %vm332_vm2, %v323_v1, 0.0  ;;  %v731_v18 = vsel %vm332_vm2, %v677_v2, 0.0 }
 0x159   :  { %v1030_v34 = vmax.f32 %v987_v7, 0.0  ;;  %v1382_v36 = vmax.f32 %v1339_v59, 0.0  ;;  %v379_v41 = vadd.f32 %v378_v17, %v377_v13  ;;  %v3891_v17 = vld [vmem:[%s5220_s0 + $0x238] sm:$0xff] }
 0x15a   :  { %v679_v37 = vmax.f32 %v637_v14, 0.0 }
 0x15b   :  { %v1085_v53 = vsel %vm332_vm2, %v1030_v34, 0.0  ;;  %v1437_v57 = vsel %vm332_vm2, %v1382_v36, 0.0  ;;  %v381_v2 = vadd.f32 %v380_v51, %v379_v41  ;;  %v3923_v34 = vld [vmem:[%s5220_s0 + $0x338] sm:$0xff] }
 0x15e   :  { %v4548_v19 = vpop.f32.mrf.mxu2  ;;  %v4550_v20 = vpop.f32.mrf.mxu3 }
 0x15f   :  { %v4565_v26 = vpop.f32.mrf.mxu0  ;;  %v4567_v27 = vpop.f32.mrf.mxu1  ;;  %v989_v16 = vadd.f32 %v4561_v23, %v4548_v19  ;;  %v1341_v35 = vadd.f32 %v4561_v23, %v4550_v20  ;;  %v325_v19 = vmax.f32 %v283_v12, 0.0  ;;  %v732_v20 = vadd.f32 %v731_v18, %v730_v25 }
 0x160   :  { %v286_v38 = vadd.f32 %v4561_v23, %v4565_v26  ;;  %v640_v43 = vadd.f32 %v4561_v23, %v4567_v27  ;;  %v735_v27 = vsel %vm332_vm2, %v679_v37, 0.0 }
 0x161   :  { %v1031_v42 = vmax.f32 %v989_v16, 0.0  ;;  %v1383_v54 = vmax.f32 %v1341_v35, 0.0  ;;  %v382_v60 = vsel %vm332_vm2, %v325_v19, 0.0  ;;  %v3939_v35 = vld [vmem:[%s5220_s0 + $0x3b8] sm:$0xff] }
 0x162   :  { %3471 = vmatmul.msk.bf16.gmra.mxu0 %vm158_vm1, %v3889_v21  ;;  %3583 = vmatmul.msk.bf16.gmra.mxu1 %vm158_vm1, %v3905_v22  ;;  %v3922_v22 = vld [vmem:[%s5220_s0 + $0x330] sm:$0xff]  ;;  %v326_v61 = vmax.f32 %v286_v38, 0.0  ;;  %v680_v0 = vmax.f32 %v640_v43, 0.0  ;;  %v383_v7 = vadd.f32 %v382_v60, %v381_v2 }
 0x163   :  { %3695 = vmatmul.msk.bf16.gmra.mxu2 %vm158_vm1, %v3921_v28  ;;  %3807 = vmatmul.msk.bf16.gmra.mxu3 %vm158_vm1, %v3937_v29  ;;  %v1082_v28 = vadd.f32 %v1081_v3, %v1080_v62  ;;  %v1434_v29 = vadd.f32 %v1433_v4, %v1432_v47  ;;  %v1087_v63 = vsel %vm332_vm2, %v1031_v42, 0.0  ;;  %v734_v3 = vadd.f32 %v733_v52, %v732_v20 }
 0x164   :  { %v1439_v47 = vsel %vm332_vm2, %v1383_v54, 0.0  ;;  %v384_v13 = vsel %vm332_vm2, %v326_v61, 0.0 }
 0x165   :  { %v1084_v45 = vadd.f32 %v1083_v32, %v1082_v28  ;;  %v1436_v50 = vadd.f32 %v1435_v33, %v1434_v29  ;;  %v385_v18 = vadd.f32 %v384_v13, %v383_v7 }
 0x166   :  { %v4585_v39 = vpop.f32.mrf.mxu2  ;;  %v4587_v40 = vpop.f32.mrf.mxu3 }
 0x167   :  { %v4591_v48 = vpop.f32.mrf.mxu0  ;;  %v4593_v49 = vpop.f32.mrf.mxu1  ;;  %v992_v26 = vadd.f32 %v4561_v23, %v4585_v39  ;;  %v1344_v1 = vadd.f32 %v4561_v23, %v4587_v40  ;;  %v1086_v4 = vadd.f32 %v1085_v53, %v1084_v45  ;;  %v1438_v46 = vadd.f32 %v1437_v57, %v1436_v50 }
 0x168   :  { %v288_v39 = vadd.f32 %v4561_v23, %v4591_v48  ;;  %v642_v5 = vadd.f32 %v4561_v23, %v4593_v49  ;;  %v737_v48 = vsel %vm332_vm2, %v680_v0, 0.0 }
 0x169   :  { %v1032_v6 = vmax.f32 %v992_v26, 0.0  ;;  %v1384_v59 = vmax.f32 %v1344_v1, 0.0  ;;  %v1440_v14 = vadd.f32 %v1439_v47, %v1438_v46 }
 0x16a   :  { %v327_v12 = vmax.f32 %v288_v39, 0.0 }
 0x16b   :  { %v1441_v36 = vsel %vm332_vm2, %v1384_v59, 0.0 }
 0x16c   :  { %v386_v19 = vsel %vm332_vm2, %v327_v12, 0.0  ;;  %v1442_v57 = vadd.f32 %v1441_v36, %v1440_v14 }
 0x16d   :  { %v387_v53 = vadd.f32 %v386_v19, %v385_v18 }
 0x16e   :  { %v4612_v8 = vpop.f32.mrf.mxu2  ;;  %v4614_v9 = vpop.f32.mrf.mxu3 }
 0x16f   :  { %v290_v15 = vpop.f32.mrf.mxu0  ;;  %v644_v21 = vpop.f32.mrf.mxu1  ;;  %v994_v49 = vadd.f32 %v4561_v23, %v4612_v8  ;;  %v3907_v8 = vld [vmem:[%s5220_s0 + $0x2b8] sm:$0xff] }
 0x170   :  { %v291_v58 = vadd.f32 %v4561_v23, %v290_v15  ;;  %v645_v40 = vadd.f32 %v4561_v23, %v644_v21  ;;  %v1089_v15 = vsel %vm332_vm2, %v1032_v6, 0.0 }
 0x171   :  { %v1033_v43 = vmax.f32 %v994_v49, 0.0 }
 0x172   :  { %3472 = vmatmul.msk.bf16.gmra.mxu0 %vm158_vm1, %v3890_v10  ;;  %3584 = vmatmul.msk.bf16.gmra.mxu1 %vm158_vm1, %v3906_v11  ;;  %v736_v10 = vadd.f32 %v735_v27, %v734_v3  ;;  %v1088_v11 = vadd.f32 %v1087_v63, %v1086_v4  ;;  %v328_v25 = vmax.f32 %v291_v58, 0.0 }
 0x173   :  { %3696 = vmatmul.msk.bf16.gmra.mxu2 %vm158_vm1, %v3922_v22  ;;  %3808 = vmatmul.msk.bf16.gmra.mxu3 %vm158_vm1, %v3938_v24  ;;  %v681_v22 = vmax.f32 %v642_v5, 0.0  ;;  %v1346_v24 = vadd.f32 %v4561_v23, %v4614_v9  ;;  %v682_v9 = vmax.f32 %v645_v40, 0.0  ;;  %v1091_v61 = vsel %vm332_vm2, %v1033_v43, 0.0 }
 0x174   :  { %v738_v30 = vadd.f32 %v737_v48, %v736_v10  ;;  %v1090_v41 = vadd.f32 %v1089_v15, %v1088_v11  ;;  %v388_v45 = vsel %vm332_vm2, %v328_v25, 0.0 }
 0x175   :  { %v739_v42 = vsel %vm332_vm2, %v681_v22, 0.0  ;;  %v1385_v20 = vmax.f32 %v1346_v24, 0.0  ;;  %v741_v54 = vsel %vm332_vm2, %v682_v9, 0.0 }
 0x176   :  { %v996_v55 = vpop.f32.mrf.mxu2  ;;  %v1348_v56 = vpop.f32.mrf.mxu3  ;;  %v740_v60 = vadd.f32 %v739_v42, %v738_v30  ;;  %v1092_v22 = vadd.f32 %v1091_v61, %v1090_v41 }
 0x177   :  { %v292_v62 = vpop.f32.mrf.mxu0  ;;  %v646_v44 = vpop.f32.mrf.mxu1  ;;  %v997_v31 = vadd.f32 %v4561_v23, %v996_v55  ;;  %v1349_v50 = vadd.f32 %v4561_v23, %v1348_v56 }
 0x178   :  { %v293_v28 = vadd.f32 %v4561_v23, %v292_v62  ;;  %v647_v21 = vadd.f32 %v4561_v23, %v646_v44  ;;  %v1443_v62 = vsel %vm332_vm2, %v1385_v20, 0.0  ;;  %v389_v44 = vadd.f32 %v388_v45, %v387_v53 }
 0x179   :  { %v1034_v26 = vmax.f32 %v997_v31, 0.0  ;;  %v742_v0 = vadd.f32 %v741_v54, %v740_v60  ;;  %v1386_v1 = vmax.f32 %v1349_v50, 0.0 }
 0x17a   :  { %v329_v51 = vmax.f32 %v293_v28, 0.0  ;;  %v683_v52 = vmax.f32 %v647_v21, 0.0 }
 0x17b   :  { %v1093_v5 = vsel %vm332_vm2, %v1034_v26, 0.0  ;;  %v1445_v25 = vsel %vm332_vm2, %v1386_v1, 0.0 }
 0x17c   :  { %v390_v39 = vsel %vm332_vm2, %v329_v51, 0.0  ;;  %v743_v2 = vsel %vm332_vm2, %v683_v52, 0.0  ;;  %v3924_v51 = vld [vmem:[%s5220_s0 + $0x340] sm:$0xff] }
 0x17d   :  { %v391_v48 = vadd.f32 %v390_v39, %v389_v44  ;;  %v744_v59 = vadd.f32 %v743_v2, %v742_v0  ;;  %v3940_v52 = vld [vmem:[%s5220_s0 + $0x3c0] sm:$0xff] }
 0x17e   :  { %v998_v29 = vpop.f32.mrf.mxu2  ;;  %v1350_v16 = vpop.f32.mrf.mxu3 }
 0x17f   :  { %v295_v32 = vpop.f32.mrf.mxu0  ;;  %v649_v33 = vpop.f32.mrf.mxu1  ;;  %v999_v55 = vadd.f32 %v4561_v23, %v998_v29  ;;  %v1351_v63 = vadd.f32 %v4561_v23, %v1350_v16  ;;  %v1444_v16 = vadd.f32 %v1443_v62, %v1442_v57 }
 0x180   :  { %v296_v37 = vadd.f32 %v4561_v23, %v295_v32  ;;  %v650_v38 = vadd.f32 %v4561_v23, %v649_v33 }
 0x181   :  { %v1035_v46 = vmax.f32 %v999_v55, 0.0  ;;  %v1387_v12 = vmax.f32 %v1351_v63, 0.0  ;;  %v1446_v33 = vadd.f32 %v1445_v25, %v1444_v16 }
 0x182   :  { %3473 = vmatmul.msk.bf16.gmra.mxu0 %vm158_vm1, %v3891_v17  ;;  %3585 = vmatmul.msk.bf16.gmra.mxu1 %vm158_vm1, %v3907_v8  ;;  %v330_v27 = vmax.f32 %v296_v37, 0.0  ;;  %v684_v56 = vmax.f32 %v650_v38, 0.0  ;;  %v1094_v17 = vadd.f32 %v1093_v5, %v1092_v22  ;;  %v3892_v37 = vld [vmem:[%s5220_s0 + $0x240] sm:$0xff] }
 0x183   :  { %3697 = vmatmul.msk.bf16.gmra.mxu2 %vm158_vm1, %v3923_v34  ;;  %3809 = vmatmul.msk.bf16.gmra.mxu3 %vm158_vm1, %v3939_v35  ;;  %v1095_v28 = vsel %vm332_vm2, %v1035_v46, 0.0  ;;  %v1447_v30 = vsel %vm332_vm2, %v1387_v12, 0.0  ;;  %v3908_v38 = vld [vmem:[%s5220_s0 + $0x2c0] sm:$0xff] }
 0x184   :  { %v392_v10 = vsel %vm332_vm2, %v330_v27, 0.0  ;;  %v745_v11 = vsel %vm332_vm2, %v684_v56, 0.0  ;;  %v1096_v34 = vadd.f32 %v1095_v28, %v1094_v17  ;;  %v1448_v53 = vadd.f32 %v1447_v30, %v1446_v33 }
 0x185   :  { %v393_v21 = vadd.f32 %v392_v10, %v391_v48  ;;  %v746_v29 = vadd.f32 %v745_v11, %v744_v59 }
 0x186   :  { %v1001_v3 = vpop.f32.mrf.mxu2  ;;  %v1353_v4 = vpop.f32.mrf.mxu3 }
 0x187   :  { %v1002_v47 = vadd.f32 %v4561_v23, %v1001_v3  ;;  %v1354_v6 = vadd.f32 %v4561_v23, %v1353_v4  ;;  %v297_v58 = vpop.f32.mrf.mxu0  ;;  %v651_v7 = vpop.f32.mrf.mxu1 }
 0x188   :  { %v298_v40 = vadd.f32 %v4561_v23, %v297_v58  ;;  %v652_v13 = vadd.f32 %v4561_v23, %v651_v7 }
 0x189   :  { %v1036_v14 = vmax.f32 %v1002_v47, 0.0  ;;  %v1388_v49 = vmax.f32 %v1354_v6, 0.0 }
 0x18a   :  { %v331_v24 = vmax.f32 %v298_v40, 0.0  ;;  %v685_v15 = vmax.f32 %v652_v13, 0.0 }
 0x18b   :  { %v1097_v9 = vsel %vm332_vm2, %v1036_v14, 0.0  ;;  %v1449_v35 = vsel %vm332_vm2, %v1388_v49, 0.0 }
 0x18c   :  { %v394_v8 = vsel %vm332_vm2, %v331_v24, 0.0  ;;  %v747_v18 = vsel %vm332_vm2, %v685_v15, 0.0  ;;  %v1098_v54 = vadd.f32 %v1097_v9, %v1096_v34  ;;  %v1450_v27 = vadd.f32 %v1449_v35, %v1448_v53 }
 0x18d   :  { %v395_v31 = vadd.f32 %v394_v8, %v393_v21  ;;  %v748_v32 = vadd.f32 %v747_v18, %v746_v29 }
 0x18e   :  { %v1003_v36 = vpop.f32.mrf.mxu2  ;;  %v1355_v19 = vpop.f32.mrf.mxu3 }
 0x18f   :  { %v396_v41 = vrot.slane %v395_v31, 4  ;;  %v749_v42 = vrot.slane %v748_v32, 4  ;;  %v1004_v43 = vadd.f32 %v4561_v23, %v1003_v36  ;;  %v1356_v20 = vadd.f32 %v4561_v23, %v1355_v19  ;;  %v1630_v45 = vpop.f32.mrf.mxu0  ;;  %v1982_v50 = vpop.f32.mrf.mxu1  ;;  %v3893_v36 = vld [vmem:[%s5220_s0 + $0x248] sm:$0xff] }
 0x190   :  { %v1631_v56 = vadd.f32 %v4561_v23, %v1630_v45  ;;  %v1983_v61 = vadd.f32 %v4561_v23, %v1982_v50  ;;  %v3909_v19 = vld [vmem:[%s5220_s0 + $0x2c8] sm:$0xff] }
 0x191   :  { %v397_v26 = vadd.f32 %v396_v41, %v395_v31  ;;  %v750_v55 = vadd.f32 %v749_v42, %v748_v32  ;;  %v1037_v57 = vmax.f32 %v1004_v43, 0.0  ;;  %v1389_v60 = vmax.f32 %v1356_v20, 0.0  ;;  %v3925_v45 = vld [vmem:[%s5220_s0 + $0x348] sm:$0xff] }
 0x192   :  { %3474 = vmatmul.msk.bf16.gmra.mxu0 %vm158_vm1, %v3892_v37  ;;  %3586 = vmatmul.msk.bf16.gmra.mxu1 %vm158_vm1, %v3908_v38  ;;  %v1710_v7 = vmax.f32 %v1631_v56, 0.0  ;;  %v2062_v10 = vmax.f32 %v1983_v61, 0.0  ;;  %v3941_v50 = vld [vmem:[%s5220_s0 + $0x3c8] sm:$0xff] }
 0x193   :  { %v398_v62 = vrot.slane %v397_v26, 2  ;;  %v751_v44 = vrot.slane %v750_v55, 2  ;;  %v1099_v63 = vsel %vm332_vm2, %v1037_v57, 0.0  ;;  %v1451_v0 = vsel %vm332_vm2, %v1389_v60, 0.0  ;;  %3698 = vmatmul.msk.bf16.gmra.mxu2 %vm158_vm1, %v3924_v51  ;;  %3810 = vmatmul.msk.bf16.gmra.mxu3 %vm158_vm1, %v3940_v52 }
 0x194   :  { %v1100_v1 = vadd.f32 %v1099_v63, %v1098_v54  ;;  %v1452_v39 = vadd.f32 %v1451_v0, %v1450_v27  ;;  %v1742_v28 = vsel %vm332_vm2, %v1710_v7, 0.0  ;;  %v2094_v21 = vsel %vm332_vm2, %v2062_v10, 0.0 }
 0x195   :  { %v399_v2 = vadd.f32 %v398_v62, %v397_v26  ;;  %v752_v3 = vadd.f32 %v751_v44, %v750_v55 }
 0x196   :  { %v1101_v4 = vrot.slane %v1100_v1, 4  ;;  %v1453_v5 = vrot.slane %v1452_v39, 4  ;;  %v2334_v46 = vpop.f32.mrf.mxu2  ;;  %v2686_v47 = vpop.f32.mrf.mxu3 }
 0x197   :  { %v400_v6 = vrot.slane %v399_v2, 1  ;;  %v753_v58 = vrot.slane %v752_v3, 1  ;;  %v1632_v11 = vpop.f32.mrf.mxu0  ;;  %v1984_v40 = vpop.f32.mrf.mxu1  ;;  %v2335_v29 = vadd.f32 %v4561_v23, %v2334_v46  ;;  %v2687_v16 = vadd.f32 %v4561_v23, %v2686_v47 }
 0x198   :  { %v1102_v13 = vadd.f32 %v1101_v4, %v1100_v1  ;;  %v1454_v48 = vadd.f32 %v1453_v5, %v1452_v39  ;;  %v1633_v59 = vadd.f32 %v4561_v23, %v1632_v11  ;;  %v1985_v12 = vadd.f32 %v4561_v23, %v1984_v40 }
 0x199   :  { %v401_v14 = vadd.f32 %v400_v6, %v399_v2  ;;  %v754_v22 = vadd.f32 %v753_v58, %v752_v3  ;;  %v2414_v37 = vmax.f32 %v2335_v29, 0.0  ;;  %v2766_v38 = vmax.f32 %v2687_v16, 0.0  ;;  %v3894_v29 = vld [vmem:[%s5220_s0 + $0x250] sm:$0xff] }
 0x19a   :  { %v1103_v49 = vrot.slane %v1102_v13, 2  ;;  %v1455_v24 = vrot.slane %v1454_v48, 2  ;;  %v1711_v15 = vmax.f32 %v1633_v59, 0.0  ;;  %v2063_v25 = vmax.f32 %v1985_v12, 0.0  ;;  %v3910_v16 = vld [vmem:[%s5220_s0 + $0x2d0] sm:$0xff] }
 0x19b   :  { %403 = vst.msk [vmem:[#allocation2] sm:$0x1] %vm402_vm3, %v401_v14  ;;  %v2446_v27 = vsel %vm332_vm2, %v2414_v37, 0.0  ;;  %v2798_v56 = vsel %vm332_vm2, %v2766_v38, 0.0 }
 0x19c   :  { %755 = vst.msk [vmem:[#allocation2 + $0x1] sm:$0x1] %vm402_vm3, %v754_v22  ;;  %v1104_v17 = vadd.f32 %v1103_v49, %v1102_v13  ;;  %v1456_v8 = vadd.f32 %v1455_v24, %v1454_v48  ;;  %v1743_v18 = vsel %vm332_vm2, %v1711_v15, 0.0  ;;  %v2095_v30 = vsel %vm332_vm2, %v2063_v25, 0.0 }
 0x19d   :  { %v1744_v9 = vadd.f32 %v1743_v18, %v1742_v28  ;;  %v2096_v31 = vadd.f32 %v2095_v30, %v2094_v21 }
 0x19e   :  { %v1105_v32 = vrot.slane %v1104_v17, 1  ;;  %v1457_v33 = vrot.slane %v1456_v8, 1  ;;  %v2336_v34 = vpop.f32.mrf.mxu2  ;;  %v2688_v35 = vpop.f32.mrf.mxu3 }
 0x19f   :  { %v2337_v41 = vadd.f32 %v4561_v23, %v2336_v34  ;;  %v2689_v42 = vadd.f32 %v4561_v23, %v2688_v35  ;;  %v1635_v43 = vpop.f32.mrf.mxu0  ;;  %v1987_v20 = vpop.f32.mrf.mxu1 }
 0x1a0   :  { %v1106_v51 = vadd.f32 %v1105_v32, %v1104_v17  ;;  %v1458_v52 = vadd.f32 %v1457_v33, %v1456_v8  ;;  %v1636_v53 = vadd.f32 %v4561_v23, %v1635_v43  ;;  %v1988_v54 = vadd.f32 %v4561_v23, %v1987_v20 }
 0x1a1   :  { %v2415_v26 = vmax.f32 %v2337_v41, 0.0  ;;  %v2767_v55 = vmax.f32 %v2689_v42, 0.0 }
 0x1a2   :  { %1107 = vst.msk [vmem:[#allocation2 + $0x2] sm:$0x1] %vm402_vm3, %v1106_v51  ;;  %v1712_v57 = vmax.f32 %v1636_v53, 0.0  ;;  %v2064_v60 = vmax.f32 %v1988_v54, 0.0  ;;  %3475 = vmatmul.msk.bf16.gmra.mxu0 %vm158_vm1, %v3893_v36  ;;  %3587 = vmatmul.msk.bf16.gmra.mxu1 %vm158_vm1, %v3909_v19 }
 0x1a3   :  { %1459 = vst.msk [vmem:[#allocation2 + $0x3] sm:$0x1] %vm402_vm3, %v1458_v52  ;;  %v2447_v61 = vsel %vm332_vm2, %v2415_v26, 0.0  ;;  %v2799_v62 = vsel %vm332_vm2, %v2767_v55, 0.0  ;;  %3699 = vmatmul.msk.bf16.gmra.mxu2 %vm158_vm1, %v3925_v45  ;;  %3811 = vmatmul.msk.bf16.gmra.mxu3 %vm158_vm1, %v3941_v50 }
 0x1a4   :  { %v2448_v44 = vadd.f32 %v2447_v61, %v2446_v27  ;;  %v2800_v63 = vadd.f32 %v2799_v62, %v2798_v56  ;;  %v1745_v0 = vsel %vm332_vm2, %v1712_v57, 0.0  ;;  %v2097_v1 = vsel %vm332_vm2, %v2064_v60, 0.0 }
 0x1a5   :  { %v1746_v39 = vadd.f32 %v1745_v0, %v1744_v9  ;;  %v2098_v2 = vadd.f32 %v2097_v1, %v2096_v31  ;;  %v3926_v9 = vld [vmem:[%s5220_s0 + $0x350] sm:$0xff] }
 0x1a6   :  { %v2339_v3 = vpop.f32.mrf.mxu2  ;;  %v2691_v4 = vpop.f32.mrf.mxu3  ;;  %v3942_v31 = vld [vmem:[%s5220_s0 + $0x3d0] sm:$0xff] }
 0x1a7   :  { %v2340_v5 = vadd.f32 %v4561_v23, %v2339_v3  ;;  %v2692_v46 = vadd.f32 %v4561_v23, %v2691_v4  ;;  %v1637_v47 = vpop.f32.mrf.mxu0  ;;  %v1989_v6 = vpop.f32.mrf.mxu1 }
 0x1a8   :  { %v1638_v58 = vadd.f32 %v4561_v23, %v1637_v47  ;;  %v1990_v7 = vadd.f32 %v4561_v23, %v1989_v6  ;;  %v3895_v47 = vld [vmem:[%s5220_s0 + $0x258] sm:$0xff] }
 0x1a9   :  { %v2416_v10 = vmax.f32 %v2340_v5, 0.0  ;;  %v2768_v11 = vmax.f32 %v2692_v46, 0.0  ;;  %v3911_v6 = vld [vmem:[%s5220_s0 + $0x2d8] sm:$0xff] }
 0x1aa   :  { %v1713_v40 = vmax.f32 %v1638_v58, 0.0  ;;  %v2065_v13 = vmax.f32 %v1990_v7, 0.0  ;;  %v2869_v48 = vld [vmem:[#allocation2 + $0x2] sm:$0x3] }
 0x1ab   :  { %v2449_v59 = vsel %vm332_vm2, %v2416_v10, 0.0  ;;  %v2801_v12 = vsel %vm332_vm2, %v2768_v11, 0.0  ;;  %2873 = vrot.lane.b32.xlu0 %v2869_v48, %s3982_s28 }
 0x1ac   :  { %v2450_v14 = vadd.f32 %v2449_v59, %v2448_v44  ;;  %v2802_v22 = vadd.f32 %v2801_v12, %v2800_v63  ;;  %v1747_v49 = vsel %vm332_vm2, %v1713_v40, 0.0  ;;  %v2099_v24 = vsel %vm332_vm2, %v2065_v13, 0.0  ;;  %v3927_v40 = vld [vmem:[%s5220_s0 + $0x358] sm:$0xff] }
 0x1ad   :  { %v1748_v15 = vadd.f32 %v1747_v49, %v1746_v39  ;;  %v2100_v25 = vadd.f32 %v2099_v24, %v2098_v2  ;;  %v3943_v13 = vld [vmem:[%s5220_s0 + $0x3d8] sm:$0xff] }
 0x1ae   :  { %v2341_v28 = vpop.f32.mrf.mxu2  ;;  %v2693_v21 = vpop.f32.mrf.mxu3 }
 0x1af   :  { %v2342_v17 = vadd.f32 %v4561_v23, %v2341_v28  ;;  %v2694_v8 = vadd.f32 %v4561_v23, %v2693_v21  ;;  %v1640_v18 = vpop.f32.mrf.mxu0  ;;  %v1992_v30 = vpop.f32.mrf.mxu1 }
 0x1b0   :  { %v1641_v32 = vadd.f32 %v4561_v23, %v1640_v18  ;;  %v1993_v33 = vadd.f32 %v4561_v23, %v1992_v30 }
 0x1b1   :  { %v2417_v34 = vmax.f32 %v2342_v17, 0.0  ;;  %v2769_v35 = vmax.f32 %v2694_v8, 0.0 }
 0x1b2   :  { %v1714_v36 = vmax.f32 %v1641_v32, 0.0  ;;  %v2066_v19 = vmax.f32 %v1993_v33, 0.0  ;;  %3476 = vmatmul.msk.bf16.gmra.mxu0 %vm158_vm1, %v3894_v29  ;;  %3588 = vmatmul.msk.bf16.gmra.mxu1 %vm158_vm1, %v3910_v16 }
 0x1b3   :  { %v2451_v37 = vsel %vm332_vm2, %v2417_v34, 0.0  ;;  %v2803_v38 = vsel %vm332_vm2, %v2769_v35, 0.0  ;;  %3700 = vmatmul.msk.bf16.gmra.mxu2 %vm158_vm1, %v3926_v9  ;;  %3812 = vmatmul.msk.bf16.gmra.mxu3 %vm158_vm1, %v3942_v31 }
 0x1b4   :  { %v2452_v41 = vadd.f32 %v2451_v37, %v2450_v14  ;;  %v2804_v42 = vadd.f32 %v2803_v38, %v2802_v22  ;;  %v1749_v43 = vsel %vm332_vm2, %v1714_v36, 0.0  ;;  %v2101_v20 = vsel %vm332_vm2, %v2066_v19, 0.0 }
 0x1b5   :  { %v1750_v45 = vadd.f32 %v1749_v43, %v1748_v15  ;;  %v2102_v50 = vadd.f32 %v2101_v20, %v2100_v25 }
 0x1b6   :  { %v2344_v51 = vpop.f32.mrf.mxu2  ;;  %v2696_v52 = vpop.f32.mrf.mxu3 }
 0x1b7   :  { %v2345_v53 = vadd.f32 %v4561_v23, %v2344_v51  ;;  %v2697_v54 = vadd.f32 %v4561_v23, %v2696_v52  ;;  %v1642_v26 = vpop.f32.mrf.mxu0  ;;  %v1994_v55 = vpop.f32.mrf.mxu1 }
 0x1b8   :  { %v1643_v57 = vadd.f32 %v4561_v23, %v1642_v26  ;;  %v1995_v60 = vadd.f32 %v4561_v23, %v1994_v55  ;;  %v3912_v26 = vld [vmem:[%s5220_s0 + $0x2e0] sm:$0xff] }
 0x1b9   :  { %v2418_v27 = vmax.f32 %v2345_v53, 0.0  ;;  %v2770_v56 = vmax.f32 %v2697_v54, 0.0  ;;  %v3896_v54 = vld [vmem:[%s5220_s0 + $0x260] sm:$0xff] }
 0x1ba   :  { %v1715_v61 = vmax.f32 %v1643_v57, 0.0  ;;  %v2067_v62 = vmax.f32 %v1995_v60, 0.0 }
 0x1bb   :  { %v2453_v44 = vsel %vm332_vm2, %v2418_v27, 0.0  ;;  %v2805_v63 = vsel %vm332_vm2, %v2770_v56, 0.0  ;;  %v3928_v56 = vld [vmem:[%s5220_s0 + $0x360] sm:$0xff] }
 0x1bc   :  { %v2454_v0 = vadd.f32 %v2453_v44, %v2452_v41  ;;  %v2806_v1 = vadd.f32 %v2805_v63, %v2804_v42  ;;  %v1751_v39 = vsel %vm332_vm2, %v1715_v61, 0.0  ;;  %v2103_v2 = vsel %vm332_vm2, %v2067_v62, 0.0  ;;  %v3944_v61 = vld [vmem:[%s5220_s0 + $0x3e0] sm:$0xff] }
 0x1bd   :  { %v1752_v3 = vadd.f32 %v1751_v39, %v1750_v45  ;;  %v2104_v4 = vadd.f32 %v2103_v2, %v2102_v50 }
 0x1be   :  { %v2346_v5 = vpop.f32.mrf.mxu2  ;;  %v2698_v46 = vpop.f32.mrf.mxu3 }
 0x1bf   :  { %v2347_v58 = vadd.f32 %v4561_v23, %v2346_v5  ;;  %v2699_v7 = vadd.f32 %v4561_v23, %v2698_v46  ;;  %v1645_v10 = vpop.f32.mrf.mxu0  ;;  %v1997_v11 = vpop.f32.mrf.mxu1 }
 0x1c0   :  { %v1646_v48 = vadd.f32 %v4561_v23, %v1645_v10  ;;  %v1998_v59 = vadd.f32 %v4561_v23, %v1997_v11 }
 0x1c1   :  { %v2419_v12 = vmax.f32 %v2347_v58, 0.0  ;;  %v2771_v14 = vmax.f32 %v2699_v7, 0.0 }
 0x1c2   :  { %v1716_v22 = vmax.f32 %v1646_v48, 0.0  ;;  %v2068_v49 = vmax.f32 %v1998_v59, 0.0  ;;  %3477 = vmatmul.msk.bf16.gmra.mxu0 %vm158_vm1, %v3895_v47  ;;  %3589 = vmatmul.msk.bf16.gmra.mxu1 %vm158_vm1, %v3911_v6 }
 0x1c3   :  { %v2455_v24 = vsel %vm332_vm2, %v2419_v12, 0.0  ;;  %v2807_v15 = vsel %vm332_vm2, %v2771_v14, 0.0  ;;  %3701 = vmatmul.msk.bf16.gmra.mxu2 %vm158_vm1, %v3927_v40  ;;  %3813 = vmatmul.msk.bf16.gmra.mxu3 %vm158_vm1, %v3943_v13 }
 0x1c4   :  { %v2456_v25 = vadd.f32 %v2455_v24, %v2454_v0  ;;  %v2808_v28 = vadd.f32 %v2807_v15, %v2806_v1  ;;  %v1753_v21 = vsel %vm332_vm2, %v1716_v22, 0.0  ;;  %v2105_v29 = vsel %vm332_vm2, %v2068_v49, 0.0 }
 0x1c5   :  { %v1754_v16 = vadd.f32 %v1753_v21, %v1752_v3  ;;  %v2106_v17 = vadd.f32 %v2105_v29, %v2104_v4 }
 0x1c6   :  { %v2349_v8 = vpop.f32.mrf.mxu2  ;;  %v2701_v18 = vpop.f32.mrf.mxu3 }
 0x1c7   :  { %v2350_v30 = vadd.f32 %v4561_v23, %v2349_v8  ;;  %v2702_v9 = vadd.f32 %v4561_v23, %v2701_v18  ;;  %v1647_v31 = vpop.f32.mrf.mxu0  ;;  %v1999_v32 = vpop.f32.mrf.mxu1 }
 0x1c8   :  { %v1648_v33 = vadd.f32 %v4561_v23, %v1647_v31  ;;  %v2000_v34 = vadd.f32 %v4561_v23, %v1999_v32  ;;  %v3913_v31 = vld [vmem:[%s5220_s0 + $0x2e8] sm:$0xff] }
 0x1c9   :  { %v2420_v35 = vmax.f32 %v2350_v30, 0.0  ;;  %v2772_v36 = vmax.f32 %v2702_v9, 0.0  ;;  %v3897_v9 = vld [vmem:[%s5220_s0 + $0x268] sm:$0xff] }
 0x1ca   :  { %v1717_v19 = vmax.f32 %v1648_v33, 0.0  ;;  %v2069_v37 = vmax.f32 %v2000_v34, 0.0 }
 0x1cb   :  { %v2457_v38 = vsel %vm332_vm2, %v2420_v35, 0.0  ;;  %v2809_v41 = vsel %vm332_vm2, %v2772_v36, 0.0  ;;  %v3929_v36 = vld [vmem:[%s5220_s0 + $0x368] sm:$0xff] }
 0x1cc   :  { %v2458_v42 = vadd.f32 %v2457_v38, %v2456_v25  ;;  %v2810_v43 = vadd.f32 %v2809_v41, %v2808_v28  ;;  %v1755_v20 = vsel %vm332_vm2, %v1717_v19, 0.0  ;;  %v2107_v45 = vsel %vm332_vm2, %v2069_v37, 0.0  ;;  %v3945_v19 = vld [vmem:[%s5220_s0 + $0x3e8] sm:$0xff] }
 0x1cd   :  { %v1756_v50 = vadd.f32 %v1755_v20, %v1754_v16  ;;  %v2108_v51 = vadd.f32 %v2107_v45, %v2106_v17 }
 0x1ce   :  { %v2351_v52 = vpop.f32.mrf.mxu2  ;;  %v2703_v53 = vpop.f32.mrf.mxu3 }
 0x1cf   :  { %v2352_v55 = vadd.f32 %v4561_v23, %v2351_v52  ;;  %v2704_v57 = vadd.f32 %v4561_v23, %v2703_v53  ;;  %v1650_v60 = vpop.f32.mrf.mxu0  ;;  %v2002_v27 = vpop.f32.mrf.mxu1 }
 0x1d0   :  { %v1651_v62 = vadd.f32 %v4561_v23, %v1650_v60  ;;  %v2003_v44 = vadd.f32 %v4561_v23, %v2002_v27 }
 0x1d1   :  { %v2421_v63 = vmax.f32 %v2352_v55, 0.0  ;;  %v2773_v0 = vmax.f32 %v2704_v57, 0.0 }
 0x1d2   :  { %v2070_v1 = vmax.f32 %v2003_v44, 0.0  ;;  %3478 = vmatmul.msk.bf16.gmra.mxu0 %vm158_vm1, %v3896_v54  ;;  %3590 = vmatmul.msk.bf16.gmra.mxu1 %vm158_vm1, %v3912_v26  ;;  %v1718_v5 = vmax.f32 %v1651_v62, 0.0  ;;  %v4915_v44 = vld [vmem:[%s5222_s2] ss:$0 sm:$0xff] }
 0x1d3   :  { %v2459_v39 = vsel %vm332_vm2, %v2421_v63, 0.0  ;;  %v2811_v2 = vsel %vm332_vm2, %v2773_v0, 0.0  ;;  %3702 = vmatmul.msk.bf16.gmra.mxu2 %vm158_vm1, %v3928_v56  ;;  %3814 = vmatmul.msk.bf16.gmra.mxu3 %vm158_vm1, %v3944_v61 }
 0x1d4   :  { %v2460_v3 = vadd.f32 %v2459_v39, %v2458_v42  ;;  %v2812_v4 = vadd.f32 %v2811_v2, %v2810_v43  ;;  %v2109_v46 = vsel %vm332_vm2, %v2070_v1, 0.0  ;;  %v1757_v13 = vsel %vm332_vm2, %v1718_v5, 0.0 }
 0x1d5   :  { %v2110_v47 = vadd.f32 %v2109_v46, %v2108_v51  ;;  %v1758_v24 = vadd.f32 %v1757_v13, %v1756_v50  ;;  %v3914_v13 = vld [vmem:[%s5220_s0 + $0x2f0] sm:$0xff] }
 0x1d6   :  { %v2354_v6 = vpop.f32.mrf.mxu2  ;;  %v2706_v58 = vpop.f32.mrf.mxu3 }
 0x1d7   :  { %v2355_v7 = vadd.f32 %v4561_v23, %v2354_v6  ;;  %v2707_v10 = vadd.f32 %v4561_v23, %v2706_v58  ;;  %v1652_v11 = vpop.f32.mrf.mxu0  ;;  %v2004_v40 = vpop.f32.mrf.mxu1 }
 0x1d8   :  { %v1653_v48 = vadd.f32 %v4561_v23, %v1652_v11  ;;  %v2005_v59 = vadd.f32 %v4561_v23, %v2004_v40  ;;  %v3898_v40 = vld [vmem:[%s5220_s0 + $0x270] sm:$0xff] }
 0x1d9   :  { %v2422_v12 = vmax.f32 %v2355_v7, 0.0  ;;  %v2774_v14 = vmax.f32 %v2707_v10, 0.0 }
 0x1da   :  { %v1719_v22 = vmax.f32 %v1653_v48, 0.0  ;;  %v2071_v49 = vmax.f32 %v2005_v59, 0.0 }
 0x1db   :  { %v2461_v15 = vsel %vm332_vm2, %v2422_v12, 0.0  ;;  %v2813_v25 = vsel %vm332_vm2, %v2774_v14, 0.0 }
 0x1dc   :  { %v2462_v28 = vadd.f32 %v2461_v15, %v2460_v3  ;;  %v2814_v21 = vadd.f32 %v2813_v25, %v2812_v4  ;;  %v1759_v29 = vsel %vm332_vm2, %v1719_v22, 0.0  ;;  %v2111_v16 = vsel %vm332_vm2, %v2071_v49, 0.0  ;;  %v3930_v22 = vld [vmem:[%s5220_s0 + $0x370] sm:$0xff] }
 0x1dd   :  { %v1760_v17 = vadd.f32 %v1759_v29, %v1758_v24  ;;  %v2112_v8 = vadd.f32 %v2111_v16, %v2110_v47  ;;  %v3946_v49 = vld [vmem:[%s5220_s0 + $0x3f0] sm:$0xff] }
 0x1de   :  { %v2356_v18 = vpop.f32.mrf.mxu2  ;;  %v2708_v30 = vpop.f32.mrf.mxu3 }
 0x1df   :  { %v2357_v32 = vadd.f32 %v4561_v23, %v2356_v18  ;;  %v2709_v33 = vadd.f32 %v4561_v23, %v2708_v30  ;;  %v1655_v34 = vpop.f32.mrf.mxu0  ;;  %v2007_v35 = vpop.f32.mrf.mxu1 }
 0x1e0   :  { %v1656_v37 = vadd.f32 %v4561_v23, %v1655_v34  ;;  %v2008_v38 = vadd.f32 %v4561_v23, %v2007_v35 }
 0x1e1   :  { %v2423_v41 = vmax.f32 %v2357_v32, 0.0  ;;  %v2775_v42 = vmax.f32 %v2709_v33, 0.0 }
 0x1e2   :  { %v1720_v43 = vmax.f32 %v1656_v37, 0.0  ;;  %v2072_v20 = vmax.f32 %v2008_v38, 0.0  ;;  %3479 = vmatmul.msk.bf16.gmra.mxu0 %vm158_vm1, %v3897_v9  ;;  %3591 = vmatmul.msk.bf16.gmra.mxu1 %vm158_vm1, %v3913_v31 }
 0x1e3   :  { %v2463_v45 = vsel %vm332_vm2, %v2423_v41, 0.0  ;;  %v2815_v50 = vsel %vm332_vm2, %v2775_v42, 0.0  ;;  %3703 = vmatmul.msk.bf16.gmra.mxu2 %vm158_vm1, %v3929_v36  ;;  %3815 = vmatmul.msk.bf16.gmra.mxu3 %vm158_vm1, %v3945_v19 }
 0x1e4   :  { %v2464_v51 = vadd.f32 %v2463_v45, %v2462_v28  ;;  %v2816_v52 = vadd.f32 %v2815_v50, %v2814_v21  ;;  %v1761_v53 = vsel %vm332_vm2, %v1720_v43, 0.0  ;;  %v2113_v54 = vsel %vm332_vm2, %v2072_v20, 0.0 }
 0x1e5   :  { %v1762_v26 = vadd.f32 %v1761_v53, %v1760_v17  ;;  %v2114_v55 = vadd.f32 %v2113_v54, %v2112_v8 }
 0x1e6   :  { %v2359_v57 = vpop.f32.mrf.mxu2  ;;  %v2711_v60 = vpop.f32.mrf.mxu3 }
 0x1e7   :  { %v2360_v27 = vadd.f32 %v4561_v23, %v2359_v57  ;;  %v2712_v56 = vadd.f32 %v4561_v23, %v2711_v60  ;;  %v1657_v61 = vpop.f32.mrf.mxu0  ;;  %v2009_v62 = vpop.f32.mrf.mxu1 }
 0x1e8   :  { %v1658_v63 = vadd.f32 %v4915_v44, %v1657_v61  ;;  %v2010_v0 = vadd.f32 %v4915_v44, %v2009_v62  ;;  %v3915_v61 = vld [vmem:[%s5220_s0 + $0x2f8] sm:$0xff] }
 0x1e9   :  { %v2424_v1 = vmax.f32 %v2360_v27, 0.0  ;;  %v2776_v39 = vmax.f32 %v2712_v56, 0.0  ;;  %v3899_v56 = vld [vmem:[%s5220_s0 + $0x278] sm:$0xff] }
 0x1ea   :  { %v1721_v2 = vmax.f32 %v1658_v63, 0.0  ;;  %v2073_v3 = vmax.f32 %v2010_v0, 0.0 }
 0x1eb   :  { %v2465_v4 = vsel %vm332_vm2, %v2424_v1, 0.0  ;;  %v2817_v5 = vsel %vm332_vm2, %v2776_v39, 0.0  ;;  %v3931_v39 = vld [vmem:[%s5220_s0 + $0x378] sm:$0xff] }
 0x1ec   :  { %v2466_v23 = vadd.f32 %v2465_v4, %v2464_v51  ;;  %v2818_v46 = vadd.f32 %v2817_v5, %v2816_v52  ;;  %v1763_v47 = vsel %vm332_vm2, %v1721_v2, 0.0  ;;  %v2115_v6 = vsel %vm332_vm2, %v2073_v3, 0.0  ;;  %v3947_v2 = vld [vmem:[%s5220_s0 + $0x3f8] sm:$0xff] }
 0x1ed   :  { %v1764_v58 = vadd.f32 %v1763_v47, %v1762_v26  ;;  %v2116_v7 = vadd.f32 %v2115_v6, %v2114_v55 }
 0x1ee   :  { %v2361_v10 = vpop.f32.mrf.mxu2  ;;  %v2713_v11 = vpop.f32.mrf.mxu3 }
 0x1ef   :  { %v2362_v48 = vadd.f32 %v4915_v44, %v2361_v10  ;;  %v2714_v59 = vadd.f32 %v4915_v44, %v2713_v11  ;;  %v1660_v12 = vpop.f32.mrf.mxu0  ;;  %v2012_v14 = vpop.f32.mrf.mxu1 }
 0x1f0   :  { %v1661_v24 = vadd.f32 %v4915_v44, %v1660_v12  ;;  %v2013_v15 = vadd.f32 %v4915_v44, %v2012_v14 }
 0x1f1   :  { %v2425_v25 = vmax.f32 %v2362_v48, 0.0  ;;  %v2777_v28 = vmax.f32 %v2714_v59, 0.0 }
 0x1f2   :  { %v1722_v21 = vmax.f32 %v1661_v24, 0.0  ;;  %v2074_v29 = vmax.f32 %v2013_v15, 0.0  ;;  %3480 = vmatmul.msk.bf16.gmra.mxu0 %vm158_vm1, %v3898_v40  ;;  %3592 = vmatmul.msk.bf16.gmra.mxu1 %vm158_vm1, %v3914_v13  ;;  %v2904_v13 = vld [vmem:[%s5223_s3 + $0x78] sm:$0xff] }
 0x1f3   :  { %v2467_v16 = vsel %vm332_vm2, %v2425_v25, 0.0  ;;  %v2819_v17 = vsel %vm332_vm2, %v2777_v28, 0.0  ;;  %3704 = vmatmul.msk.bf16.gmra.mxu2 %vm158_vm1, %v3930_v22  ;;  %3816 = vmatmul.msk.bf16.gmra.mxu3 %vm158_vm1, %v3946_v49 }
 0x1f4   :  { %v2468_v8 = vadd.f32 %v2467_v16, %v2466_v23  ;;  %v2820_v18 = vadd.f32 %v2819_v17, %v2818_v46  ;;  %v1765_v30 = vsel %vm332_vm2, %v1722_v21, 0.0  ;;  %v2117_v9 = vsel %vm332_vm2, %v2074_v29, 0.0  ;;  %2909 = vmatpush.msra.mxu0 %v2904_v13 }
 0x1f5   :  { %v1766_v31 = vadd.f32 %v1765_v30, %v1764_v58  ;;  %v2118_v32 = vadd.f32 %v2117_v9, %v2116_v7 }
 0x1f6   :  { %v2364_v33 = vpop.f32.mrf.mxu2  ;;  %v2716_v34 = vpop.f32.mrf.mxu3 }
 0x1f7   :  { %v2365_v35 = vadd.f32 %v4915_v44, %v2364_v33  ;;  %v2717_v36 = vadd.f32 %v4915_v44, %v2716_v34  ;;  %v1662_v19 = vpop.f32.mrf.mxu0  ;;  %v2014_v37 = vpop.f32.mrf.mxu1 }
 0x1f8   :  { %v1663_v38 = vadd.f32 %v4915_v44, %v1662_v19  ;;  %v2015_v41 = vadd.f32 %v4915_v44, %v2014_v37 }
 0x1f9   :  { %v2426_v42 = vmax.f32 %v2365_v35, 0.0  ;;  %v2778_v43 = vmax.f32 %v2717_v36, 0.0 }
 0x1fa   :  { %v1723_v20 = vmax.f32 %v1663_v38, 0.0  ;;  %v2075_v45 = vmax.f32 %v2015_v41, 0.0 }
 0x1fb   :  { %v2469_v50 = vsel %vm332_vm2, %v2426_v42, 0.0  ;;  %v2821_v51 = vsel %vm332_vm2, %v2778_v43, 0.0 }
 0x1fc   :  { %v2470_v52 = vadd.f32 %v2469_v50, %v2468_v8  ;;  %v2822_v53 = vadd.f32 %v2821_v51, %v2820_v18  ;;  %v1767_v54 = vsel %vm332_vm2, %v1723_v20, 0.0  ;;  %v2119_v26 = vsel %vm332_vm2, %v2075_v45, 0.0 }
 0x1fd   :  { %v1768_v55 = vadd.f32 %v1767_v54, %v1766_v31  ;;  %v2120_v57 = vadd.f32 %v2119_v26, %v2118_v32 }
 0x1fe   :  { %v2366_v60 = vpop.f32.mrf.mxu2  ;;  %v2718_v27 = vpop.f32.mrf.mxu3 }
 0x1ff   :  { %v2367_v62 = vadd.f32 %v4915_v44, %v2366_v60  ;;  %v2719_v63 = vadd.f32 %v4915_v44, %v2718_v27  ;;  %v1665_v0 = vpop.f32.mrf.mxu0  ;;  %v2017_v1 = vpop.f32.mrf.mxu1  ;;  %v2903_v60 = vld [vmem:[%s5223_s3 + $0x70] sm:$0xff] }
 0x200   :  { %v1666_v3 = vadd.f32 %v4915_v44, %v1665_v0  ;;  %v2018_v4 = vadd.f32 %v4915_v44, %v2017_v1  ;;  %2910 = vmatpush.msra.mxu0 %v2903_v60 }
 0x201   :  { %v2427_v5 = vmax.f32 %v2367_v62, 0.0  ;;  %v2779_v23 = vmax.f32 %v2719_v63, 0.0 }
 0x202   :  { %v1724_v46 = vmax.f32 %v1666_v3, 0.0  ;;  %v2076_v47 = vmax.f32 %v2018_v4, 0.0  ;;  %3481 = vmatmul.msk.bf16.gmra.mxu0 %vm158_vm1, %v3899_v56  ;;  %3593 = vmatmul.msk.bf16.gmra.mxu1 %vm158_vm1, %v3915_v61 }
 0x203   :  { %v2471_v6 = vsel %vm332_vm2, %v2427_v5, 0.0  ;;  %v2823_v58 = vsel %vm332_vm2, %v2779_v23, 0.0  ;;  %3705 = vmatmul.msk.bf16.gmra.mxu2 %vm158_vm1, %v3931_v39  ;;  %3817 = vmatmul.msk.bf16.gmra.mxu3 %vm158_vm1, %v3947_v2 }
 0x204   :  { %v2472_v7 = vadd.f32 %v2471_v6, %v2470_v52  ;;  %v2824_v10 = vadd.f32 %v2823_v58, %v2822_v53  ;;  %v1769_v11 = vsel %vm332_vm2, %v1724_v46, 0.0  ;;  %v2121_v40 = vsel %vm332_vm2, %v2076_v47, 0.0 }
 0x205   :  { %v1770_v48 = vadd.f32 %v1769_v11, %v1768_v55  ;;  %v2122_v59 = vadd.f32 %v2121_v40, %v2120_v57 }
 0x206   :  { %v2369_v12 = vpop.f32.mrf.mxu2  ;;  %v2721_v14 = vpop.f32.mrf.mxu3 }
 0x207   :  { %v2370_v22 = vadd.f32 %v4915_v44, %v2369_v12  ;;  %v2722_v49 = vadd.f32 %v4915_v44, %v2721_v14  ;;  %v1667_v24 = vpop.f32.mrf.mxu0  ;;  %v2019_v15 = vpop.f32.mrf.mxu1 }
 0x208   :  { %v1668_v25 = vadd.f32 %v4915_v44, %v1667_v24  ;;  %v2020_v28 = vadd.f32 %v4915_v44, %v2019_v15 }
 0x209   :  { %v2428_v21 = vmax.f32 %v2370_v22, 0.0  ;;  %v2780_v29 = vmax.f32 %v2722_v49, 0.0 }
 0x20a   :  { %v1725_v16 = vmax.f32 %v1668_v25, 0.0  ;;  %v2077_v17 = vmax.f32 %v2020_v28, 0.0 }
 0x20b   :  { %v2473_v8 = vsel %vm332_vm2, %v2428_v21, 0.0  ;;  %v2825_v18 = vsel %vm332_vm2, %v2780_v29, 0.0 }
 0x20c   :  { %v2474_v30 = vadd.f32 %v2473_v8, %v2472_v7  ;;  %v2826_v9 = vadd.f32 %v2825_v18, %v2824_v10  ;;  %v1771_v31 = vsel %vm332_vm2, %v1725_v16, 0.0  ;;  %v2123_v32 = vsel %vm332_vm2, %v2077_v17, 0.0 }
 0x20d   :  { %v1772_v33 = vadd.f32 %v1771_v31, %v1770_v48  ;;  %v2124_v34 = vadd.f32 %v2123_v32, %v2122_v59  ;;  %v2902_v31 = vld [vmem:[%s5223_s3 + $0x68] sm:$0xff] }
 0x20e   :  { %v2371_v35 = vpop.f32.mrf.mxu2  ;;  %v2723_v36 = vpop.f32.mrf.mxu3  ;;  %2911 = vmatpush.msra.mxu0 %v2902_v31 }
 0x20f   :  { %v2372_v19 = vadd.f32 %v4915_v44, %v2371_v35  ;;  %v2724_v37 = vadd.f32 %v4915_v44, %v2723_v36  ;;  %v1670_v38 = vpop.f32.mrf.mxu0  ;;  %v2022_v41 = vpop.f32.mrf.mxu1 }
 0x210   :  { %v1671_v42 = vadd.f32 %v4915_v44, %v1670_v38  ;;  %v2023_v43 = vadd.f32 %v4915_v44, %v2022_v41 }
 0x211   :  { %v2429_v20 = vmax.f32 %v2372_v19, 0.0  ;;  %v2781_v45 = vmax.f32 %v2724_v37, 0.0 }
 0x212   :  { %v1726_v50 = vmax.f32 %v1671_v42, 0.0  ;;  %v2078_v51 = vmax.f32 %v2023_v43, 0.0 }
 0x213   :  { %v2475_v52 = vsel %vm332_vm2, %v2429_v20, 0.0  ;;  %v2827_v53 = vsel %vm332_vm2, %v2781_v45, 0.0 }
 0x214   :  { %v2476_v54 = vadd.f32 %v2475_v52, %v2474_v30  ;;  %v2828_v26 = vadd.f32 %v2827_v53, %v2826_v9  ;;  %v1773_v55 = vsel %vm332_vm2, %v1726_v50, 0.0  ;;  %v2125_v57 = vsel %vm332_vm2, %v2078_v51, 0.0 }
 0x215   :  { %v1774_v27 = vadd.f32 %v1773_v55, %v1772_v33  ;;  %v2126_v56 = vadd.f32 %v2125_v57, %v2124_v34 }
 0x216   :  { %v2374_v61 = vpop.f32.mrf.mxu2  ;;  %v2726_v62 = vpop.f32.mrf.mxu3 }
 0x217   :  { %v2375_v63 = vadd.f32 %v4915_v44, %v2374_v61  ;;  %v2727_v0 = vadd.f32 %v4915_v44, %v2726_v62  ;;  %v1672_v1 = vpop.f32.mrf.mxu0  ;;  %v2024_v39 = vpop.f32.mrf.mxu1 }
 0x218   :  { %v1673_v2 = vadd.f32 %v4915_v44, %v1672_v1  ;;  %v2025_v3 = vadd.f32 %v4915_v44, %v2024_v39 }
 0x219   :  { %v2430_v4 = vmax.f32 %v2375_v63, 0.0  ;;  %v2782_v5 = vmax.f32 %v2727_v0, 0.0 }
 0x21a   :  { %v1727_v23 = vmax.f32 %v1673_v2, 0.0  ;;  %v2079_v46 = vmax.f32 %v2025_v3, 0.0 }
 0x21b   :  { %v2477_v47 = vsel %vm332_vm2, %v2430_v4, 0.0  ;;  %v2829_v6 = vsel %vm332_vm2, %v2782_v5, 0.0 }
 0x21c   :  { %v2478_v58 = vadd.f32 %v2477_v47, %v2476_v54  ;;  %v2830_v7 = vadd.f32 %v2829_v6, %v2828_v26  ;;  %v1775_v10 = vsel %vm332_vm2, %v1727_v23, 0.0  ;;  %v2127_v11 = vsel %vm332_vm2, %v2079_v46, 0.0 }
 0x21d   :  { %v1776_v40 = vadd.f32 %v1775_v10, %v1774_v27  ;;  %v2128_v13 = vadd.f32 %v2127_v11, %v2126_v56  ;;  %v2901_v10 = vld [vmem:[%s5223_s3 + $0x60] sm:$0xff] }
 0x21e   :  { %v2376_v48 = vpop.f32.mrf.mxu2  ;;  %v2728_v59 = vpop.f32.mrf.mxu3  ;;  %2912 = vmatpush.msra.mxu0 %v2901_v10 }
 0x21f   :  { %v2377_v12 = vadd.f32 %v4915_v44, %v2376_v48  ;;  %v2729_v14 = vadd.f32 %v4915_v44, %v2728_v59  ;;  %v1675_v22 = vpop.f32.mrf.mxu0  ;;  %v2027_v49 = vpop.f32.mrf.mxu1 }
 0x220   :  { %v1676_v24 = vadd.f32 %v4915_v44, %v1675_v22  ;;  %v2028_v15 = vadd.f32 %v4915_v44, %v2027_v49 }
 0x221   :  { %v2431_v25 = vmax.f32 %v2377_v12, 0.0  ;;  %v2783_v28 = vmax.f32 %v2729_v14, 0.0 }
 0x222   :  { %v1728_v21 = vmax.f32 %v1676_v24, 0.0  ;;  %v2080_v29 = vmax.f32 %v2028_v15, 0.0 }
 0x223   :  { %v2479_v16 = vsel %vm332_vm2, %v2431_v25, 0.0  ;;  %v2831_v17 = vsel %vm332_vm2, %v2783_v28, 0.0 }
 0x224   :  { %v2480_v8 = vadd.f32 %v2479_v16, %v2478_v58  ;;  %v2832_v18 = vadd.f32 %v2831_v17, %v2830_v7  ;;  %v1777_v30 = vsel %vm332_vm2, %v1728_v21, 0.0  ;;  %v2129_v9 = vsel %vm332_vm2, %v2080_v29, 0.0 }
 0x225   :  { %v1778_v32 = vadd.f32 %v1777_v30, %v1776_v40  ;;  %v2130_v33 = vadd.f32 %v2129_v9, %v2128_v13 }
 0x226   :  { %v2379_v34 = vpop.f32.mrf.mxu2  ;;  %v2731_v35 = vpop.f32.mrf.mxu3 }
 0x227   :  { %v2380_v36 = vadd.f32 %v4915_v44, %v2379_v34  ;;  %v2732_v19 = vadd.f32 %v4915_v44, %v2731_v35  ;;  %v1677_v37 = vpop.f32.mrf.mxu0  ;;  %v2029_v38 = vpop.f32.mrf.mxu1 }
 0x228   :  { %v1678_v41 = vadd.f32 %v4915_v44, %v1677_v37  ;;  %v2030_v42 = vadd.f32 %v4915_v44, %v2029_v38 }
 0x229   :  { %v2432_v43 = vmax.f32 %v2380_v36, 0.0  ;;  %v2784_v20 = vmax.f32 %v2732_v19, 0.0  ;;  %v2899_v19 = vld [vmem:[%s5223_s3 + $0x50] sm:$0xff] }
 0x22a   :  { %v1729_v45 = vmax.f32 %v1678_v41, 0.0  ;;  %v2081_v50 = vmax.f32 %v2030_v42, 0.0 }
 0x22b   :  { %v2481_v51 = vsel %vm332_vm2, %v2432_v43, 0.0  ;;  %v2833_v52 = vsel %vm332_vm2, %v2784_v20, 0.0 }
 0x22c   :  { %v2482_v53 = vadd.f32 %v2481_v51, %v2480_v8  ;;  %v2834_v54 = vadd.f32 %v2833_v52, %v2832_v18  ;;  %v1779_v26 = vsel %vm332_vm2, %v1729_v45, 0.0  ;;  %v2131_v55 = vsel %vm332_vm2, %v2081_v50, 0.0  ;;  %v2900_v18 = vld [vmem:[%s5223_s3 + $0x58] sm:$0xff] }
 0x22d   :  { %v1780_v57 = vadd.f32 %v1779_v26, %v1778_v32  ;;  %v2132_v60 = vadd.f32 %v2131_v55, %v2130_v33  ;;  %2913 = vmatpush.msra.mxu0 %v2900_v18  ;;  %v2898_v26 = vld [vmem:[%s5223_s3 + $0x48] sm:$0xff] }
 0x22e   :  { %v2381_v27 = vpop.f32.mrf.mxu2  ;;  %v2733_v56 = vpop.f32.mrf.mxu3 }
 0x22f   :  { %v2382_v61 = vadd.f32 %v4915_v44, %v2381_v27  ;;  %v2734_v62 = vadd.f32 %v4915_v44, %v2733_v56  ;;  %v1680_v63 = vpop.f32.mrf.mxu0  ;;  %v2032_v0 = vpop.f32.mrf.mxu1  ;;  %2914 = vmatpush.msra.mxu0 %v2899_v19 }
 0x230   :  { %v1681_v1 = vadd.f32 %v4915_v44, %v1680_v63  ;;  %v2033_v39 = vadd.f32 %v4915_v44, %v2032_v0 }
 0x231   :  { %v2433_v2 = vmax.f32 %v2382_v61, 0.0  ;;  %v2785_v3 = vmax.f32 %v2734_v62, 0.0  ;;  %2915 = vmatpush.msra.mxu0 %v2898_v26 }
 0x232   :  { %v1730_v4 = vmax.f32 %v1681_v1, 0.0  ;;  %v2082_v5 = vmax.f32 %v2033_v39, 0.0 }
 0x233   :  { %v2483_v23 = vsel %vm332_vm2, %v2433_v2, 0.0  ;;  %v2835_v46 = vsel %vm332_vm2, %v2785_v3, 0.0 }
 0x234   :  { %v2484_v47 = vadd.f32 %v2483_v23, %v2482_v53  ;;  %v2836_v6 = vadd.f32 %v2835_v46, %v2834_v54  ;;  %v1781_v58 = vsel %vm332_vm2, %v1730_v4, 0.0  ;;  %v2133_v7 = vsel %vm332_vm2, %v2082_v5, 0.0 }
 0x235   :  { %v5039_v11 = vadd.f32 %v1781_v58, %v1780_v57  ;;  %v5041_v40 = vadd.f32 %v2133_v7, %v2132_v60 }
 0x236   :  { %v2384_v13 = vpop.f32.mrf.mxu2  ;;  %v2736_v48 = vpop.f32.mrf.mxu3 }
 0x237   :  { %v2385_v59 = vadd.f32 %v4915_v44, %v2384_v13  ;;  %v2737_v12 = vadd.f32 %v4915_v44, %v2736_v48  ;;  %v1682_v14 = vpop.f32.mrf.mxu0  ;;  %v2034_v22 = vpop.f32.mrf.mxu1 }
 0x238   :  { %v1683_v51 = vadd.f32 %v4915_v44, %v1682_v14  ;;  %v2035_v52 = vadd.f32 %v4915_v44, %v2034_v22 }
 0x239   :  { %v2434_v49 = vmax.f32 %v2385_v59, 0.0  ;;  %v2786_v24 = vmax.f32 %v2737_v12, 0.0 }
 0x23a   :  { %v1731_v55 = vmax.f32 %v1683_v51, 0.0  ;;  %v2083_v57 = vmax.f32 %v2035_v52, 0.0 }
 0x23b   :  { %v2485_v15 = vsel %vm332_vm2, %v2434_v49, 0.0  ;;  %v2837_v25 = vsel %vm332_vm2, %v2786_v24, 0.0 }
 0x23c   :  { %v5047_v28 = vadd.f32 %v2485_v15, %v2484_v47  ;;  %v5049_v21 = vadd.f32 %v2837_v25, %v2836_v6  ;;  %v1783_v5 = vsel %vm332_vm2, %v1731_v55, 0.0  ;;  %v2135_v23 = vsel %vm332_vm2, %v2083_v57, 0.0 }
 0x23d   :  { %v1784_v59 = vadd.f32 %v1783_v5, %v5039_v11  ;;  %v2136_v12 = vadd.f32 %v2135_v23, %v5041_v40 }
 0x23e   :  { %v2386_v29 = vpop.f32.mrf.mxu2  ;;  %v2738_v16 = vpop.f32.mrf.mxu3 }
 0x23f   :  { %v1685_v17 = vpop.f32.mrf.mxu0  ;;  %v2037_v8 = vpop.f32.mrf.mxu1  ;;  %v2387_v53 = vadd.f32 %v4915_v44, %v2386_v29  ;;  %v2739_v54 = vadd.f32 %v4915_v44, %v2738_v16 }
 0x240   :  { %v1686_v60 = vadd.f32 %v4915_v44, %v1685_v17  ;;  %v2038_v27 = vadd.f32 %v4915_v44, %v2037_v8 }
 0x241   :  { %v2435_v0 = vmax.f32 %v2387_v53, 0.0  ;;  %v2787_v1 = vmax.f32 %v2739_v54, 0.0 }
 0x242   :  { %v1732_v46 = vmax.f32 %v1686_v60, 0.0  ;;  %v2084_v47 = vmax.f32 %v2038_v27, 0.0 }
 0x243   :  { %v2487_v7 = vsel %vm332_vm2, %v2435_v0, 0.0  ;;  %v2839_v10 = vsel %vm332_vm2, %v2787_v1, 0.0 }
 0x244   :  { %v1785_v49 = vsel %vm332_vm2, %v1732_v46, 0.0  ;;  %v2137_v24 = vsel %vm332_vm2, %v2084_v47, 0.0  ;;  %v2488_v29 = vadd.f32 %v2487_v7, %v5047_v28  ;;  %v2840_v16 = vadd.f32 %v2839_v10, %v5049_v21 }
 0x245   :  { %v2138_v28 = vadd.f32 %v2137_v24, %v2136_v12 }
 0x246   :  { %v2389_v30 = vpop.f32.mrf.mxu2  ;;  %v2741_v9 = vpop.f32.mrf.mxu3 }
 0x247   :  { %v1687_v31 = vpop.f32.mrf.mxu0  ;;  %v2039_v32 = vpop.f32.mrf.mxu1  ;;  %v2390_v56 = vadd.f32 %v4915_v44, %v2389_v30  ;;  %v2742_v61 = vadd.f32 %v4915_v44, %v2741_v9 }
 0x248   :  { %v1688_v3 = vadd.f32 %v4915_v44, %v1687_v31  ;;  %v2040_v4 = vadd.f32 %v4915_v44, %v2039_v32 }
 0x249   :  { %v2436_v6 = vmax.f32 %v2390_v56, 0.0  ;;  %v2788_v58 = vmax.f32 %v2742_v61, 0.0 }
 0x24a   :  { %v1733_v14 = vmax.f32 %v1688_v3, 0.0  ;;  %v2085_v22 = vmax.f32 %v2040_v4, 0.0 }
 0x24b   :  { %v2489_v17 = vsel %vm332_vm2, %v2436_v6, 0.0  ;;  %v2841_v11 = vsel %vm332_vm2, %v2788_v58, 0.0 }
 0x24c   :  { %v1787_v21 = vsel %vm332_vm2, %v1733_v14, 0.0  ;;  %v2490_v53 = vadd.f32 %v2489_v17, %v2488_v29  ;;  %v2842_v54 = vadd.f32 %v2841_v11, %v2840_v16 }
 0x24e   :  { %v2391_v33 = vpop.f32.mrf.mxu2  ;;  %v2743_v34 = vpop.f32.mrf.mxu3 }
 0x24f   :  { %v1690_v35 = vpop.f32.mrf.mxu0  ;;  %v2042_v36 = vpop.f32.mrf.mxu1  ;;  %v2392_v13 = vadd.f32 %v4915_v44, %v2391_v33  ;;  %v2744_v48 = vadd.f32 %v4915_v44, %v2743_v34  ;;  %v1786_v34 = vadd.f32 %v1785_v49, %v1784_v59 }
 0x250   :  { %v1691_v15 = vadd.f32 %v4915_v44, %v1690_v35  ;;  %v2043_v25 = vadd.f32 %v4915_v44, %v2042_v36  ;;  %v2139_v35 = vsel %vm332_vm2, %v2085_v22, 0.0 }
 0x251   :  { %v2437_v18 = vmax.f32 %v2392_v13, 0.0  ;;  %v2789_v30 = vmax.f32 %v2744_v48, 0.0  ;;  %v1788_v27 = vadd.f32 %v1787_v21, %v1786_v34  ;;  %v2140_v56 = vadd.f32 %v2139_v35, %v2138_v28 }
 0x252   :  { %v1734_v36 = vmax.f32 %v1691_v15, 0.0  ;;  %v2086_v19 = vmax.f32 %v2043_v25, 0.0 }
 0x253   :  { %v2491_v26 = vsel %vm332_vm2, %v2437_v18, 0.0  ;;  %v2843_v55 = vsel %vm332_vm2, %v2789_v30, 0.0 }
 0x254   :  { %v1789_v61 = vsel %vm332_vm2, %v1734_v36, 0.0  ;;  %v2492_v1 = vadd.f32 %v2491_v26, %v2490_v53  ;;  %v2844_v3 = vadd.f32 %v2843_v55, %v2842_v54 }
 0x255   :  { %v1790_v10 = vadd.f32 %v1789_v61, %v1788_v27 }
 0x256   :  { %v2394_v37 = vpop.f32.mrf.mxu2  ;;  %v2746_v38 = vpop.f32.mrf.mxu3 }
 0x257   :  { %v1692_v41 = vpop.f32.mrf.mxu0  ;;  %v2044_v42 = vpop.f32.mrf.mxu1  ;;  %v2395_v9 = vadd.f32 %v4915_v44, %v2394_v37  ;;  %v2747_v31 = vadd.f32 %v4915_v44, %v2746_v38 }
 0x258   :  { %v1693_v51 = vadd.f32 %v4915_v44, %v1692_v41  ;;  %v2045_v52 = vadd.f32 %v4915_v44, %v2044_v42 }
 0x259   :  { %v2438_v57 = vmax.f32 %v2395_v9, 0.0  ;;  %v2790_v60 = vmax.f32 %v2747_v31, 0.0 }
 0x25a   :  { %v1735_v0 = vmax.f32 %v1693_v51, 0.0 }
 0x25b   :  { %v2493_v47 = vsel %vm332_vm2, %v2438_v57, 0.0  ;;  %v2845_v6 = vsel %vm332_vm2, %v2790_v60, 0.0 }
 0x25c   :  { %v1791_v12 = vsel %vm332_vm2, %v1735_v0, 0.0  ;;  %v2846_v24 = vadd.f32 %v2845_v6, %v2844_v3  ;;  %v2897_v3 = vld [vmem:[%s5223_s3 + $0x40] sm:$0xff] }
 0x25d   :  { %v1792_v11 = vadd.f32 %v1791_v12, %v1790_v10  ;;  %2916 = vmatpush.msra.mxu0 %v2897_v3 }
 0x25e   :  { %v5057_v43 = vpop.f32.mrf.mxu2  ;;  %v5059_v20 = vpop.f32.mrf.mxu3 }
 0x25f   :  { %v5061_v45 = vpop.f32.mrf.mxu0  ;;  %v5063_v50 = vpop.f32.mrf.mxu1  ;;  %v2397_v37 = vadd.f32 %v4915_v44, %v5057_v43  ;;  %v2749_v38 = vadd.f32 %v4915_v44, %v5059_v20  ;;  %v2141_v43 = vsel %vm332_vm2, %v2086_v19, 0.0  ;;  %v2087_v20 = vmax.f32 %v2045_v52, 0.0 }
 0x260   :  { %v1696_v41 = vadd.f32 %v4915_v44, %v5061_v45  ;;  %v2048_v42 = vadd.f32 %v4915_v44, %v5063_v50  ;;  %v2142_v13 = vadd.f32 %v2141_v43, %v2140_v56 }
 0x261   :  { %v2439_v4 = vmax.f32 %v2397_v37, 0.0  ;;  %v2791_v5 = vmax.f32 %v2749_v38, 0.0  ;;  %v2143_v14 = vsel %vm332_vm2, %v2087_v20, 0.0 }
 0x262   :  { %v1736_v48 = vmax.f32 %v1696_v41, 0.0  ;;  %v2088_v59 = vmax.f32 %v2048_v42, 0.0  ;;  %v2144_v18 = vadd.f32 %v2143_v14, %v2142_v13 }
 0x263   :  { %v2847_v15 = vsel %vm332_vm2, %v2791_v5, 0.0 }
 0x264   :  { %v1793_v30 = vsel %vm332_vm2, %v1736_v48, 0.0  ;;  %v2848_v21 = vadd.f32 %v2847_v15, %v2846_v24 }
 0x266   :  { %v5076_v62 = vpop.f32.mrf.mxu2  ;;  %v5078_v63 = vpop.f32.mrf.mxu3 }
 0x267   :  { %v5080_v39 = vpop.f32.mrf.mxu0  ;;  %v5082_v2 = vpop.f32.mrf.mxu1  ;;  %v2400_v45 = vadd.f32 %v4915_v44, %v5076_v62  ;;  %v2752_v50 = vadd.f32 %v4915_v44, %v5078_v63  ;;  %v2494_v62 = vadd.f32 %v2493_v47, %v2492_v1  ;;  %v2495_v63 = vsel %vm332_vm2, %v2439_v4, 0.0  ;;  %v2896_v4 = vld [vmem:[%s5223_s3 + $0x38] sm:$0xff] }
 0x268   :  { %v1698_v22 = vadd.f32 %v4915_v44, %v5080_v39  ;;  %v2050_v49 = vadd.f32 %v4915_v44, %v5082_v2  ;;  %v2145_v39 = vsel %vm332_vm2, %v2088_v59, 0.0  ;;  %2917 = vmatpush.msra.mxu0 %v2896_v4 }
 0x269   :  { %v2440_v25 = vmax.f32 %v2400_v45, 0.0  ;;  %v2792_v29 = vmax.f32 %v2752_v50, 0.0  ;;  %v2496_v28 = vadd.f32 %v2495_v63, %v2494_v62  ;;  %v2146_v38 = vadd.f32 %v2145_v39, %v2144_v18 }
 0x26a   :  { %v1737_v9 = vmax.f32 %v1698_v22, 0.0  ;;  %v2089_v2 = vmax.f32 %v2050_v49, 0.0 }
 0x26b   :  { %v2497_v19 = vsel %vm332_vm2, %v2440_v25, 0.0  ;;  %v2849_v51 = vsel %vm332_vm2, %v2792_v29, 0.0 }
 0x26c   :  { %v1795_v55 = vsel %vm332_vm2, %v1737_v9, 0.0  ;;  %v2147_v57 = vsel %vm332_vm2, %v2089_v2, 0.0  ;;  %v2498_v56 = vadd.f32 %v2497_v19, %v2496_v28  ;;  %v2850_v41 = vadd.f32 %v2849_v51, %v2848_v21 }
 0x26d   :  { %v2148_v47 = vadd.f32 %v2147_v57, %v2146_v38  ;;  %v2893_v38 = vld [vmem:[%s5223_s3 + $0x20] sm:$0xff] }
 0x26e   :  { %v5102_v8 = vpop.f32.mrf.mxu2  ;;  %v5104_v40 = vpop.f32.mrf.mxu3 }
 0x26f   :  { %v1700_v32 = vpop.f32.mrf.mxu0  ;;  %v2052_v33 = vpop.f32.mrf.mxu1  ;;  %v2402_v31 = vadd.f32 %v4915_v44, %v5102_v8  ;;  %v2754_v34 = vadd.f32 %v4915_v44, %v5104_v40  ;;  %v1794_v8 = vadd.f32 %v1793_v30, %v1792_v11 }
 0x270   :  { %v1701_v16 = vadd.f32 %v4915_v44, %v1700_v32  ;;  %v2053_v17 = vadd.f32 %v4915_v44, %v2052_v33 }
 0x271   :  { %v2441_v60 = vmax.f32 %v2402_v31, 0.0  ;;  %v2793_v27 = vmax.f32 %v2754_v34, 0.0  ;;  %v1796_v5 = vadd.f32 %v1795_v55, %v1794_v8 }
 0x272   :  { %v1738_v52 = vmax.f32 %v1701_v16, 0.0  ;;  %v2090_v53 = vmax.f32 %v2053_v17, 0.0 }
 0x273   :  { %v2499_v50 = vsel %vm332_vm2, %v2441_v60, 0.0 }
 0x274   :  { %v1797_v43 = vsel %vm332_vm2, %v1738_v52, 0.0  ;;  %v2149_v0 = vsel %vm332_vm2, %v2090_v53, 0.0 }
 0x275   :  { %v2150_v10 = vadd.f32 %v2149_v0, %v2148_v47  ;;  %v2891_v47 = vld [vmem:[%s5223_s3 + $0x10] sm:$0xff] }
 0x276   :  { %v2404_v23 = vpop.f32.mrf.mxu2  ;;  %v2756_v46 = vpop.f32.mrf.mxu3 }
 0x277   :  { %v1702_v58 = vpop.f32.mrf.mxu0  ;;  %v2054_v7 = vpop.f32.mrf.mxu1  ;;  %v2405_v20 = vadd.f32 %v4915_v44, %v2404_v23  ;;  %v2757_v1 = vadd.f32 %v4915_v44, %v2756_v46 }
 0x278   :  { %v1703_v32 = vadd.f32 %v4915_v44, %v1702_v58  ;;  %v2055_v33 = vadd.f32 %v4915_v44, %v2054_v7  ;;  %v2851_v58 = vsel %vm332_vm2, %v2793_v27, 0.0  ;;  %v1798_v7 = vadd.f32 %v1797_v43, %v1796_v5  ;;  %v2892_v43 = vld [vmem:[%s5223_s3 + $0x18] sm:$0xff] }
 0x279   :  { %v2442_v14 = vmax.f32 %v2405_v20, 0.0  ;;  %v2794_v22 = vmax.f32 %v2757_v1, 0.0  ;;  %v2852_v19 = vadd.f32 %v2851_v58, %v2850_v41 }
 0x27a   :  { %v1739_v42 = vmax.f32 %v1703_v32, 0.0  ;;  %v2091_v61 = vmax.f32 %v2055_v33, 0.0  ;;  %v2895_v33 = vld [vmem:[%s5223_s3 + $0x30] sm:$0xff] }
 0x27b   :  { %v2501_v34 = vsel %vm332_vm2, %v2442_v14, 0.0  ;;  %v2853_v28 = vsel %vm332_vm2, %v2794_v22, 0.0  ;;  %2918 = vmatpush.msra.mxu0 %v2895_v33 }
 0x27c   :  { %v1799_v13 = vsel %vm332_vm2, %v1739_v42, 0.0  ;;  %v2151_v48 = vsel %vm332_vm2, %v2091_v61, 0.0 }
 0x27d   :  { %v1800_v17 = vadd.f32 %v1799_v13, %v1798_v7  ;;  %v2152_v11 = vadd.f32 %v2151_v48, %v2150_v10 }
 0x27e   :  { %v2406_v35 = vpop.f32.mrf.mxu2  ;;  %v2758_v36 = vpop.f32.mrf.mxu3 }
 0x27f   :  { %v1705_v54 = vpop.f32.mrf.mxu0  ;;  %v2057_v37 = vpop.f32.mrf.mxu1  ;;  %v2407_v23 = vadd.f32 %v4915_v44, %v2406_v35  ;;  %v2759_v46 = vadd.f32 %v4915_v44, %v2758_v36  ;;  %v2894_v35 = vld [vmem:[%s5223_s3 + $0x28] sm:$0xff]  ;;  %v2500_v36 = vadd.f32 %v2499_v50, %v2498_v56 }
 0x280   :  { %v1706_v40 = vadd.f32 %v4915_v44, %v1705_v54  ;;  %v2058_v26 = vadd.f32 %v4915_v44, %v2057_v37  ;;  %2919 = vmatpush.msra.mxu0 %v2894_v35 }
 0x281   :  { %v2443_v18 = vmax.f32 %v2407_v23, 0.0  ;;  %v2795_v30 = vmax.f32 %v2759_v46, 0.0  ;;  %v2890_v46 = vld [vmem:[%s5223_s3 + $0x8] sm:$0xff] }
 0x282   :  { %v1740_v6 = vmax.f32 %v1706_v40, 0.0  ;;  %v2092_v45 = vmax.f32 %v2058_v26, 0.0  ;;  %v2502_v40 = vadd.f32 %v2501_v34, %v2500_v36  ;;  %v2854_v26 = vadd.f32 %v2853_v28, %v2852_v19  ;;  %2920 = vmatpush.msra.mxu0 %v2893_v38  ;;  %v2868_v28 = vld [vmem:[#allocation2] sm:$0x3] }
 0x283   :  { %v2503_v53 = vsel %vm332_vm2, %v2443_v18, 0.0  ;;  %v2855_v54 = vsel %vm332_vm2, %v2795_v30, 0.0  ;;  %v3953_v36 = vld [vmem:[%s5224_s4] ss:$0 sm:$0xff] }
 0x284   :  { %v1801_v15 = vsel %vm332_vm2, %v1740_v6, 0.0  ;;  %v2153_v25 = vsel %vm332_vm2, %v2092_v45, 0.0  ;;  %v2504_v0 = vadd.f32 %v2503_v53, %v2502_v40  ;;  %v2856_v20 = vadd.f32 %v2855_v54, %v2854_v26  ;;  %2921 = vmatpush.msra.mxu0 %v2892_v43 }
 0x285   :  { %v1802_v21 = vadd.f32 %v1801_v15, %v1800_v17  ;;  %v2154_v32 = vadd.f32 %v2153_v25, %v2152_v11 }
 0x286   :  { %v2409_v59 = vpop.f32.mrf.mxu2  ;;  %v2761_v12 = vpop.f32.mrf.mxu3  ;;  %2922 = vmatpush.msra.mxu0 %v2891_v47 }
 0x287   :  { %v2410_v49 = vadd.f32 %v4915_v44, %v2409_v59  ;;  %v2762_v62 = vadd.f32 %v4915_v44, %v2761_v12  ;;  %v1707_v24 = vpop.f32.mrf.mxu0  ;;  %v2059_v63 = vpop.f32.mrf.mxu1  ;;  %v2889_v59 = vld [vmem:[%s5223_s3] sm:$0xff]  ;;  %s3983_s3 = smov 64  }
 0x288   :  { %v1708_v29 = vadd.f32 %v4915_v44, %v1707_v24  ;;  %v2060_v16 = vadd.f32 %v4915_v44, %v2059_v63  ;;  %2923 = vmatpush.msra.mxu0 %v2890_v46 }
 0x289   :  { %v2444_v39 = vmax.f32 %v2410_v49, 0.0  ;;  %v2796_v9 = vmax.f32 %v2762_v62, 0.0 }
 0x28a   :  { %v1741_v2 = vmax.f32 %v1708_v29, 0.0  ;;  %v2093_v31 = vmax.f32 %v2060_v16, 0.0  ;;  %2924 = vmatpush.msra.mxu0 %v2889_v59 }
 0x28b   :  { %v2505_v55 = vsel %vm332_vm2, %v2444_v39, 0.0  ;;  %v2857_v57 = vsel %vm332_vm2, %v2796_v9, 0.0 }
 0x28c   :  { %v1803_v51 = vsel %vm332_vm2, %v1741_v2, 0.0  ;;  %v2155_v52 = vsel %vm332_vm2, %v2093_v31, 0.0  ;;  %v2506_v6 = vadd.f32 %v2505_v55, %v2504_v0  ;;  %v2858_v45 = vadd.f32 %v2857_v57, %v2856_v20  ;;  %v2874_v31 = vpop.permute.xlu0 %2873 }
 0x28d   :  { %v1804_v37 = vadd.f32 %v1803_v51, %v1802_v21  ;;  %v2156_v8 = vadd.f32 %v2155_v52, %v2154_v32  ;;  %v2884_v21 = vsel %vm332_vm2, %v2868_v28, %v2874_v31 }
 0x28e   :  { %v2411_v60 = vpop.f32.mrf.mxu2  ;;  %v2763_v27 = vpop.f32.mrf.mxu3 }
 0x28f   :  { %v1805_v56 = vrot.slane %v1804_v37, 4  ;;  %v2157_v41 = vrot.slane %v2156_v8, 4  ;;  %v2412_v42 = vadd.f32 %v4915_v44, %v2411_v60  ;;  %v2764_v61 = vadd.f32 %v4915_v44, %v2763_v27 }
 0x291   :  { %v1806_v1 = vadd.f32 %v1805_v56, %v1804_v37  ;;  %v2158_v3 = vadd.f32 %v2157_v41, %v2156_v8  ;;  %v2445_v4 = vmax.f32 %v2412_v42, 0.0  ;;  %v2797_v5 = vmax.f32 %v2764_v61, 0.0 }
 0x293   :  { %v1807_v50 = vrot.slane %v1806_v1, 2  ;;  %v2159_v44 = vrot.slane %v2158_v3, 2  ;;  %v2507_v58 = vsel %vm332_vm2, %v2445_v4, 0.0  ;;  %v2859_v23 = vsel %vm332_vm2, %v2797_v5, 0.0 }
 0x294   :  { %v2508_v7 = vadd.f32 %v2507_v58, %v2506_v6  ;;  %v2860_v10 = vadd.f32 %v2859_v23, %v2858_v45 }
 0x295   :  { %v1808_v13 = vadd.f32 %v1807_v50, %v1806_v1  ;;  %v2160_v48 = vadd.f32 %v2159_v44, %v2158_v3 }
 0x296   :  { %v2509_v12 = vrot.slane %v2508_v7, 4  ;;  %v2861_v14 = vrot.slane %v2860_v10, 4 }
 0x297   :  { %v1809_v22 = vrot.slane %v1808_v13, 1  ;;  %v2161_v49 = vrot.slane %v2160_v48, 1 }
 0x298   :  { %v2510_v62 = vadd.f32 %v2509_v12, %v2508_v7  ;;  %v2862_v24 = vadd.f32 %v2861_v14, %v2860_v10 }
 0x299   :  { %v1810_v63 = vadd.f32 %v1809_v22, %v1808_v13  ;;  %v2162_v15 = vadd.f32 %v2161_v49, %v2160_v48 }
 0x29a   :  { %v2511_v25 = vrot.slane %v2510_v62, 2  ;;  %v2863_v29 = vrot.slane %v2862_v24, 2 }
 0x29b   :  { %1811 = vst.msk [vmem:[#allocation2 + $0x4] sm:$0x1] %vm402_vm3, %v1810_v63 }
 0x29c   :  { %2163 = vst.msk [vmem:[#allocation2 + $0x5] sm:$0x1] %vm402_vm3, %v2162_v15  ;;  %v2512_v16 = vadd.f32 %v2511_v25, %v2510_v62  ;;  %v2864_v17 = vadd.f32 %v2863_v29, %v2862_v24 }
 0x29e   :  { %v2513_v11 = vrot.slane %v2512_v16, 1  ;;  %v2865_v18 = vrot.slane %v2864_v17, 1 }
 0x2a0   :  { %v2514_v30 = vadd.f32 %v2513_v11, %v2512_v16  ;;  %v2866_v39 = vadd.f32 %v2865_v18, %v2864_v17 }
 0x2a2   :  { %2515 = vst.msk [vmem:[#allocation2 + $0x6] sm:$0x1] %vm402_vm3, %v2514_v30 }
 0x2a3   :  { %2867 = vst.msk [vmem:[#allocation2 + $0x7] sm:$0x1] %vm402_vm3, %v2866_v39  ;;  %v2870_v9 = vld [vmem:[#allocation2 + $0x4] sm:$0x3] }
 0x2a4   :  { %2877 = vrot.lane.b32.xlu0 %v2870_v9, %s3983_s3 }
 0x2aa   :  { %v2871_v2 = vld [vmem:[#allocation2 + $0x6] sm:$0x3] }
 0x2ab   :  { %2881 = vrot.lane.b32.xlu1 %v2871_v2, %s3984_s29 }
 0x316   :  { %v2878_v34 = vpop.permute.xlu0 %2877 }
 0x317   :  { %v2886_v32 = vsel %vm2885_vm4, %v2884_v21, %v2878_v34 }
 0x31d   :  { %v2882_v33 = vpop.permute.xlu1 %2881 }
 0x31e   :  { %v2888_v35 = vsel %vm2887_vm5, %v2886_v32, %v2882_v33 }
 0x31f   :  { %2925 = vmatmul.f32.vlgmr.msra.gmra.mxu0 %v2888_v35 }
 0x39c   :  { %v2926_v19 = vpop.f32.mrf.mxu0 }
 0x39d   :  { %v2927_v51 = vadd.f32 %v3953_v36, %v2926_v19 }
 0x39f   :  { %2929 = vst [vmem:[#allocation3] sm:$0x3] %v2927_v51 }
 0x3a0   :  { %2940 = dma.vmem_to_hbm [thread:$0]  %s2936_s7, 32, %s2938_s10, [#allocation4]  }
 0x3a1   :  { %3980 = dma.done.wait [#allocation4], 32  }
 0x3a2   :  { %3981 = vsyncadd [#allocation4], 4294967264 }
 0x3a3   :  { %2945 = vsyncpa [#allocation4], 1 }

</bundles_post_ra>
